<compile_context>
chip_gen: v7x
topology: tpu7x:2x2x1
jax: 0.10.0
libtpu: 0.0.40
codegen_flags: <defaults>
</compile_context>

<pallas_src>
import functools
import math

import numpy as np
import jax
import jax.numpy as jnp
from jax import lax
from jax.experimental import pallas as pl
from jax.experimental.pallas import tpu as pltpu


# ----------------------------------------------------------------------------
# Tiling / VMEM policy.
# ----------------------------------------------------------------------------
_VMEM_LIMIT_BYTES = 48 * 1024 * 1024   # below v7x 64 MiB physical, above the
                                       # 32/16 MiB default scoped limit on v6e/v5e
_VMEM_TILE_BUDGET = 24 * 1024 * 1024   # per-grid-step working-set target
_TARGET_LANES = 8192                   # lane width beyond which returns diminish
_MIN_GRID_STEPS = 2                    # keep both v7x TensorCores busy


def _vmem_bytes_per_step(W, c_in, c_out, K):
    f32 = 4
    c_max = max(c_in, c_out)
    io = 2 * (c_in + c_out) * W * f32            # double-buffered x / out blocks
    act = (2 * c_in + 3 * c_out) * W * f32       # x, h, res, c1/h2, c2 live slabs
    win = K * c_max * W * f32                    # shared windows scratch
    mask = 2 * K * W * f32                       # per-tap validity masks
    weights = 2 * f32 * (c_out * K * (c_in + c_out) + c_out * (c_in + 4))
    return io + act + win + mask + weights


def _pick_batch_tile(n, L, c_in, c_out, K):
    """Largest batch tile with 128-aligned lane width that fits the per-step
    VMEM budget, stays under the lane target, and (when possible) leaves at
    least _MIN_GRID_STEPS grid steps."""
    divisors = [bt for bt in range(1, n + 1) if n % bt == 0]

    def feasible(bt, need_aligned):
        W = bt * L
        if need_aligned and W % 128 != 0:
            return False
        if bt > 1 and W > _TARGET_LANES:
            return False
        return _vmem_bytes_per_step(W, c_in, c_out, K) <= _VMEM_TILE_BUDGET

    for need_steps in (True, False):          # prefer >= 2 grid steps (v7x)
        for need_aligned in (True, False):    # prefer unmasked full-width stores
            cands = [bt for bt in divisors
                     if feasible(bt, need_aligned)
                     and (not need_steps or n // bt >= _MIN_GRID_STEPS)]
            if cands:
                return max(cands)
    # TODO(synk): tile along L as well when a single batch element exceeds the
    # VMEM budget (very long sequences); batch-only tiling is used here.
    return 1


# ----------------------------------------------------------------------------
# Exact GELU (erf form, matching PyTorch F.gelu default).  erf via the
# Abramowitz & Stegun 7.1.26 polynomial (|err| < 1.5e-7).  The divide goes to
# the EUP slot via pl.reciprocal(approx=True); exp also runs on the EUP.
# ----------------------------------------------------------------------------
def _gelu_erf(x):
    a1, a2, a3, a4, a5 = (0.254829592, -0.284496736, 1.421413741,
                          -1.453152027, 1.061405429)
    pc = 0.3275911
    z = x * 0.7071067811865476          # x / sqrt(2)
    az = jnp.abs(z)
    t = pl.reciprocal(1.0 + pc * az, approx=True)
    poly = ((((a5 * t + a4) * t + a3) * t + a2) * t + a1) * t
    erf_abs = 1.0 - poly * jnp.exp(-az * az)
    erf = jnp.where(z >= 0.0, erf_abs, -erf_abs)
    return 0.5 * x * (1.0 + erf)


# ----------------------------------------------------------------------------
# Kernel: one batch tile (batch_tile elements packed into lanes) per grid step.
# ----------------------------------------------------------------------------
def _convblock_kernel(*refs, tap_shifts, has_projector, c_in, c_out):
    if has_projector:
        (mask_ref, x_ref, w1_ref, b1_ref, w2_ref, b2_ref,
         pw_ref, pb_ref, out_ref, win_ref) = refs
    else:
        (mask_ref, x_ref, w1_ref, b1_ref, w2_ref, b2_ref,
         out_ref, win_ref) = refs
        pw_ref = pb_ref = None

    K = len(tap_shifts)
    W = x_ref.shape[1]

    x = x_ref[...].astype(jnp.float32)      # (C_in, W)
    masks = mask_ref[...]                   # (K, W) static 0/1 validity masks

    # residual / projector path (1x1 conv == matmul)
    if has_projector:
        res = jnp.dot(pw_ref[...], x,
                      preferred_element_type=jnp.float32) + pb_ref[...]
    else:
        res = x

    def build_windows(a, C):
        # Write the K dilated taps of `a` (zeroed outside each length-L batch
        # segment == Conv1d zero padding, no cross-batch bleed) directly into
        # the shared VMEM scratch; return the (K*C, W) view.
        for k, s in enumerate(tap_shifts):
            if s == 0:
                piece = a                                   # identity tap: no roll/mask
            else:
                rolled = pltpu.roll(a, shift=(-s) % W, axis=1)   # XLU rotate
                piece = rolled * masks[k:k + 1, :]
            win_ref[k * C:(k + 1) * C, :] = piece
        return win_ref[0:K * C, :]

    # SamePadConv #1 : single fused matmul (C_out, K*C_in) @ (K*C_in, W)
    h = _gelu_erf(x)
    c1 = jnp.dot(w1_ref[...], build_windows(h, c_in),
                 preferred_element_type=jnp.float32) + b1_ref[...]

    # SamePadConv #2
    h2 = _gelu_erf(c1)
    c2 = jnp.dot(w2_ref[...], build_windows(h2, c_out),
                 preferred_element_type=jnp.float32) + b2_ref[...]

    out_ref[...] = (c2 + res).astype(out_ref.dtype)


# ----------------------------------------------------------------------------
# Wrappers
# ----------------------------------------------------------------------------
def _full_spec(shape):
    zeros = (0,) * len(shape)
    return pl.BlockSpec(shape, lambda i, _z=zeros: _z)


def _round_up(v, m):
    return (v + m - 1) // m * m


def _pad_rows(a, rows, axis=0):
    pad = rows - a.shape[axis]
    if pad == 0:
        return a
    widths = [(0, 0)] * a.ndim
    widths[axis] = (0, pad)
    return jnp.pad(a, widths)


def conv_block_apply_packed(xp, params, *, kernel_size, dilation, seq_len,
                            final=False, batch_tile=None):
    """ConvBlock on lane-dense packed activations.

    xp: (C_in, N*L) with each batch element a contiguous length-L lane segment.
    Returns (C_out, N*L) in the same layout (chain across stacked blocks
    without re-packing).
    """
    C_in, total = xp.shape
    L = seq_len
    assert total % L == 0
    N = total // L
    C_out = params["w1"].shape[0]
    has_projector = (C_in != C_out) or final
    if not has_projector:
        assert C_in == C_out

    K, dil = kernel_size, dilation
    rf = (K - 1) * dil + 1
    p = rf // 2
    tap_shifts = tuple(k * dil - p for k in range(K))
    # NOTE: SamePadConv's `remove` (even receptive field) only drops the extra
    # trailing output position; computing exactly L outputs here is equivalent.

    # Pad channels to sublane multiples of 8 so the windows slab / weight rows
    # stay (8,128)-tile aligned (copy-free, unmasked stores).
    C_in_p, C_out_p = _round_up(C_in, 8), _round_up(C_out, 8)
    C_max = max(C_in_p, C_out_p)

    if batch_tile is None:
        batch_tile = _pick_batch_tile(N, L, C_in_p, C_out_p, K)
    assert N % batch_tile == 0
    W = batch_tile * L
    n_tiles = N // batch_tile

    xp_p = _pad_rows(xp, C_in_p)

    # Conv weights reshaped for the fused-tap matmul: (C_out, C_in, K) ->
    # (C_out, K, C_in) -> (C_out, K*C_in), matching the stacked-window rows.
    w1 = _pad_rows(_pad_rows(params["w1"], C_out_p, 0), C_in_p, 1)
    w2 = _pad_rows(_pad_rows(params["w2"], C_out_p, 0), C_out_p, 1)
    w1f = jnp.transpose(w1, (0, 2, 1)).reshape(C_out_p, K * C_in_p)
    w2f = jnp.transpose(w2, (0, 2, 1)).reshape(C_out_p, K * C_out_p)
    b1 = _pad_rows(params["b1"], C_out_p).reshape(C_out_p, 1)
    b2 = _pad_rows(params["b2"], C_out_p).reshape(C_out_p, 1)

    # Static per-tap validity masks (computed once at trace time).
    j_local = np.arange(W) % L
    mask = np.zeros((K, W), np.float32)
    for k, s in enumerate(tap_shifts):
        mask[k] = ((j_local + s >= 0) & (j_local + s < L)).astype(np.float32)
    mask = jnp.asarray(mask)

    args = [mask, xp_p, w1f, b1, w2f, b2]
    if has_projector:
        pw = _pad_rows(_pad_rows(params["proj_w"], C_out_p, 0), C_in_p, 1)
        pb = _pad_rows(params["proj_b"], C_out_p).reshape(C_out_p, 1)
        args += [pw, pb]

    in_specs = ([_full_spec(mask.shape),
                 pl.BlockSpec((C_in_p, W), lambda i: (0, i))]
                + [_full_spec(a.shape) for a in args[2:]])
    out_spec = pl.BlockSpec((C_out_p, W), lambda i: (0, i))

    kernel = functools.partial(
        _convblock_kernel, tap_shifts=tap_shifts,
        has_projector=has_projector, c_in=C_in_p, c_out=C_out_p)

    outp = pl.pallas_call(
        kernel,
        out_shape=jax.ShapeDtypeStruct((C_out_p, N * L), xp.dtype),
        grid=(n_tiles,),
        in_specs=in_specs,
        out_specs=out_spec,
        scratch_shapes=[pltpu.VMEM((K * C_max, W), jnp.float32)],
        compiler_params=pltpu.CompilerParams(
            dimension_semantics=("parallel",),
            vmem_limit_bytes=_VMEM_LIMIT_BYTES),
    )(*args)

    return outp[:C_out]


def conv_block_forward(x, params, *, kernel_size, dilation, final=False,
                       batch_tile=None):
    """ConvBlock forward.  x: (N, C_in, L) -> (N, C_out, L).

    For stacked blocks, prefer conv_block_apply_packed on the (C, N*L) layout
    to avoid the per-block pack/unpack transposes.
    """
    N, C_in, L = x.shape
    xp = jnp.transpose(x, (1, 0, 2)).reshape(C_in, N * L)
    outp = conv_block_apply_packed(xp, params, kernel_size=kernel_size,
                                   dilation=dilation, seq_len=L, final=final,
                                   batch_tile=batch_tile)
    C_out = outp.shape[0]
    return jnp.transpose(outp.reshape(C_out, N, L), (1, 0, 2))


# ----------------------------------------------------------------------------
# Pure-JAX reference (mirrors the PyTorch ConvBlock forward).
# ----------------------------------------------------------------------------
def reference_forward(x, params, *, kernel_size, dilation, final=False):
    C_in = x.shape[1]
    C_out = params["w1"].shape[0]
    has_projector = (C_in != C_out) or final
    K, dil = kernel_size, dilation
    rf = (K - 1) * dil + 1
    p = rf // 2

    def conv(v, w, b):
        out = lax.conv_general_dilated(
            v, w, window_strides=(1,), padding=[(p, p)], rhs_dilation=(dil,),
            dimension_numbers=("NCH", "OIH", "NCH"))
        out = out + b[None, :, None]
        if rf % 2 == 0:
            out = out[:, :, :-1]          # SamePadConv "remove"
        return out

    residual = x
    if has_projector:
        residual = (jnp.einsum("oi,nil->nol", params["proj_w"], x)
                    + params["proj_b"][None, :, None])
    h = jax.nn.gelu(x, approximate=False)
    h = conv(h, params["w1"], params["b1"])
    h = jax.nn.gelu(h, approximate=False)
    h = conv(h, params["w2"], params["b2"])
    return h + residual


# ----------------------------------------------------------------------------
# Deterministic parameter init (PyTorch Conv1d-style uniform bounds).
# ----------------------------------------------------------------------------
def init_params(key, c_in, c_out, kernel_size, has_projector):
    ks = jax.random.split(key, 6)

    def u(k, shape, fan_in):
        b = 1.0 / math.sqrt(fan_in)
        return jax.random.uniform(k, shape, jnp.float32, -b, b)

    params = {
        "w1": u(ks[0], (c_out, c_in, kernel_size), c_in * kernel_size),
        "b1": u(ks[1], (c_out,), c_in * kernel_size),
        "w2": u(ks[2], (c_out, c_out, kernel_size), c_out * kernel_size),
        "b2": u(ks[3], (c_out,), c_out * kernel_size),
    }
    if has_projector:
        params["proj_w"] = u(ks[4], (c_out, c_in), c_in)   # 1x1 conv weight
        params["proj_b"] = u(ks[5], (c_out,), c_in)
    return params


if __name__ == "__main__":
    N, C_in, C_out, L = 8, 16, 32, 128
    kernel_size, dilation = 3, 2

    key = jax.random.PRNGKey(0)
    k_p, k_x = jax.random.split(key)
    params = init_params(k_p, C_in, C_out, kernel_size,
                         has_projector=(C_in != C_out))
    x = jax.random.normal(k_x, (N, C_in, L), jnp.float32)

    out = conv_block_forward(x, params, kernel_size=kernel_size,
                             dilation=dilation)
    out = jax.block_until_ready(out)

    ref = jax.block_until_ready(
        reference_forward(x, params, kernel_size=kernel_size,
                          dilation=dilation))

    max_err = float(jnp.max(jnp.abs(out - ref)))
    assert out.shape == (N, C_out, L)
    # Tolerance covers the approx-reciprocal (EUP) GELU divide; real bugs show
    # up as O(0.1-1) errors.
    assert max_err < 5e-3, f"mismatch vs reference: {max_err}"
    print("KERNEL_OK")
</pallas_src>

<mosaic_0001>
module attributes {stable_mosaic.version = 11 : i64} {
  func.func @_convblock_kernel(%arg0: i32, %arg1: memref<3x512xf32, #tpu.memory_space<vmem>>, %arg2: memref<16x512xf32, #tpu.memory_space<vmem>>, %arg3: memref<32x48xf32, #tpu.memory_space<vmem>>, %arg4: memref<32x1xf32, #tpu.memory_space<vmem>>, %arg5: memref<32x96xf32, #tpu.memory_space<vmem>>, %arg6: memref<32x1xf32, #tpu.memory_space<vmem>>, %arg7: memref<32x16xf32, #tpu.memory_space<vmem>>, %arg8: memref<32x1xf32, #tpu.memory_space<vmem>>, %arg9: memref<32x512xf32, #tpu.memory_space<vmem>>, %arg10: memref<96x512xf32, #tpu.memory_space<vmem>>) attributes {dimension_semantics = [#tpu.dimension_semantics<parallel>], iteration_bounds = array<i64: 2>, scalar_prefetch = 0 : i64, scratch_operands = 1 : i64, tpu.core_type = #tpu.core_type<tc>, window_params = [{pipeline_mode = #tpu.pipeline_mode<synchronous>, transform_indices = @transform_0, window_bounds = array<i64: 3, 512>}, {transform_indices = @transform_1, window_bounds = array<i64: 16, 512>}, {pipeline_mode = #tpu.pipeline_mode<synchronous>, transform_indices = @transform_2, window_bounds = array<i64: 32, 48>}, {pipeline_mode = #tpu.pipeline_mode<synchronous>, transform_indices = @transform_3, window_bounds = array<i64: 32, 1>}, {pipeline_mode = #tpu.pipeline_mode<synchronous>, transform_indices = @transform_4, window_bounds = array<i64: 32, 96>}, {pipeline_mode = #tpu.pipeline_mode<synchronous>, transform_indices = @transform_5, window_bounds = array<i64: 32, 1>}, {pipeline_mode = #tpu.pipeline_mode<synchronous>, transform_indices = @transform_6, window_bounds = array<i64: 32, 16>}, {pipeline_mode = #tpu.pipeline_mode<synchronous>, transform_indices = @transform_7, window_bounds = array<i64: 32, 1>}, {transform_indices = @transform_8, window_bounds = array<i64: 32, 512>}]} {
    %c0 = arith.constant 0 : index
    %c0_0 = arith.constant 0 : index
    %0 = vector.load %arg2[%c0, %c0_0] : memref<16x512xf32, #tpu.memory_space<vmem>>, vector<16x512xf32>
    %c0_1 = arith.constant 0 : index
    %c0_2 = arith.constant 0 : index
    %1 = vector.load %arg1[%c0_1, %c0_2] : memref<3x512xf32, #tpu.memory_space<vmem>>, vector<3x512xf32>
    %c0_3 = arith.constant 0 : index
    %c0_4 = arith.constant 0 : index
    %2 = vector.load %arg7[%c0_3, %c0_4] : memref<32x16xf32, #tpu.memory_space<vmem>>, vector<32x16xf32>
    %cst = arith.constant dense<0.000000e+00> : vector<32x512xf32>
    %3 = tpu.matmul %2, %0, %cst {dimension_numbers = #tpu.dot_dimension_numbers<[1], [0], [0], [1], [0, 0, 1, 1], [], []>} : vector<32x16xf32>, vector<16x512xf32>, vector<32x512xf32> -> vector<32x512xf32>
    %c0_5 = arith.constant 0 : index
    %c0_6 = arith.constant 0 : index
    %4 = vector.load %arg8[%c0_5, %c0_6] : memref<32x1xf32, #tpu.memory_space<vmem>>, vector<32x1xf32>
    %5 = vector.broadcast %4 : vector<32x1xf32> to vector<32x512xf32>
    %6 = arith.addf %3, %5 : vector<32x512xf32>
    %cst_7 = arith.constant 0.707106769 : f32
    %7 = vector.broadcast %cst_7 : f32 to vector<16x512xf32>
    %8 = arith.mulf %0, %7 : vector<16x512xf32>
    %9 = math.absf %8 : vector<16x512xf32>
    %cst_8 = arith.constant 0.327591091 : f32
    %10 = vector.broadcast %cst_8 : f32 to vector<16x512xf32>
    %11 = arith.mulf %10, %9 : vector<16x512xf32>
    %cst_9 = arith.constant 1.000000e+00 : f32
    %12 = vector.broadcast %cst_9 : f32 to vector<16x512xf32>
    %13 = arith.addf %12, %11 : vector<16x512xf32>
    %14 = tpu.reciprocal %13 {approx = true} : vector<16x512xf32> -> vector<16x512xf32>
    %cst_10 = arith.constant 1.06140542 : f32
    %15 = vector.broadcast %cst_10 : f32 to vector<16x512xf32>
    %16 = arith.mulf %15, %14 : vector<16x512xf32>
    %cst_11 = arith.constant -1.45315206 : f32
    %17 = vector.broadcast %cst_11 : f32 to vector<16x512xf32>
    %18 = arith.addf %16, %17 : vector<16x512xf32>
    %19 = arith.mulf %18, %14 : vector<16x512xf32>
    %cst_12 = arith.constant 1.42141378 : f32
    %20 = vector.broadcast %cst_12 : f32 to vector<16x512xf32>
    %21 = arith.addf %19, %20 : vector<16x512xf32>
    %22 = arith.mulf %21, %14 : vector<16x512xf32>
    %cst_13 = arith.constant -0.284496725 : f32
    %23 = vector.broadcast %cst_13 : f32 to vector<16x512xf32>
    %24 = arith.addf %22, %23 : vector<16x512xf32>
    %25 = arith.mulf %24, %14 : vector<16x512xf32>
    %cst_14 = arith.constant 0.254829586 : f32
    %26 = vector.broadcast %cst_14 : f32 to vector<16x512xf32>
    %27 = arith.addf %25, %26 : vector<16x512xf32>
    %28 = arith.mulf %27, %14 : vector<16x512xf32>
    %cst_15 = arith.constant 0.000000e+00 : f32
    %29 = vector.broadcast %cst_15 : f32 to vector<16x512xf32>
    %30 = arith.subf %29, %9 : vector<16x512xf32>
    %31 = arith.mulf %30, %9 : vector<16x512xf32>
    %32 = math.exp %31 : vector<16x512xf32>
    %33 = arith.mulf %28, %32 : vector<16x512xf32>
    %cst_16 = arith.constant 1.000000e+00 : f32
    %34 = vector.broadcast %cst_16 : f32 to vector<16x512xf32>
    %35 = arith.subf %34, %33 : vector<16x512xf32>
    %cst_17 = arith.constant 0.000000e+00 : f32
    %36 = vector.broadcast %cst_17 : f32 to vector<16x512xf32>
    %37 = arith.cmpf oge, %8, %36 : vector<16x512xf32>
    %cst_18 = arith.constant 0.000000e+00 : f32
    %38 = vector.broadcast %cst_18 : f32 to vector<16x512xf32>
    %39 = arith.subf %38, %35 : vector<16x512xf32>
    %40 = arith.select %37, %35, %39 : vector<16x512xi1>, vector<16x512xf32>
    %cst_19 = arith.constant 5.000000e-01 : f32
    %41 = vector.broadcast %cst_19 : f32 to vector<16x512xf32>
    %42 = arith.mulf %41, %0 : vector<16x512xf32>
    %cst_20 = arith.constant 1.000000e+00 : f32
    %43 = vector.broadcast %cst_20 : f32 to vector<16x512xf32>
    %44 = arith.addf %43, %40 : vector<16x512xf32>
    %45 = arith.mulf %42, %44 : vector<16x512xf32>
    %c0_21 = arith.constant 0 : index
    %c0_22 = arith.constant 0 : index
    %46 = vector.load %arg3[%c0_21, %c0_22] : memref<32x48xf32, #tpu.memory_space<vmem>>, vector<32x48xf32>
    %c2_i32 = arith.constant 2 : i32
    %47 = tpu.dynamic_rotate %45 by %c2_i32 dim 1 : vector<16x512xf32>, i32 -> vector<16x512xf32>
    %48 = vector.extract_strided_slice %1 {offsets = [0, 0], sizes = [1, 512], strides = [1, 1]} : vector<3x512xf32> to vector<1x512xf32>
    %49 = vector.broadcast %48 : vector<1x512xf32> to vector<16x512xf32>
    %50 = arith.mulf %47, %49 : vector<16x512xf32>
    %c0_23 = arith.constant 0 : index
    %c0_24 = arith.constant 0 : index
    %51 = vector.load %arg10[%c0_23, %c0_24] : memref<96x512xf32, #tpu.memory_space<vmem>>, vector<16x512xf32>
    tpu.vector_store %arg10[%c0_23, %c0_24], %50 {strides = array<i32>} : memref<96x512xf32, #tpu.memory_space<vmem>>, vector<16x512xf32>,
    %c16 = arith.constant 16 : index
    %c0_25 = arith.constant 0 : index
    %52 = vector.load %arg10[%c16, %c0_25] : memref<96x512xf32, #tpu.memory_space<vmem>>, vector<16x512xf32>
    tpu.vector_store %arg10[%c16, %c0_25], %45 {strides = array<i32>} : memref<96x512xf32, #tpu.memory_space<vmem>>, vector<16x512xf32>,
    %c510_i32 = arith.constant 510 : i32
    %53 = tpu.dynamic_rotate %45 by %c510_i32 dim 1 : vector<16x512xf32>, i32 -> vector<16x512xf32>
    %54 = vector.extract_strided_slice %1 {offsets = [2, 0], sizes = [1, 512], strides = [1, 1]} : vector<3x512xf32> to vector<1x512xf32>
    %55 = vector.broadcast %54 : vector<1x512xf32> to vector<16x512xf32>
    %56 = arith.mulf %53, %55 : vector<16x512xf32>
    %c32 = arith.constant 32 : index
    %c0_26 = arith.constant 0 : index
    %57 = vector.load %arg10[%c32, %c0_26] : memref<96x512xf32, #tpu.memory_space<vmem>>, vector<16x512xf32>
    tpu.vector_store %arg10[%c32, %c0_26], %56 {strides = array<i32>} : memref<96x512xf32, #tpu.memory_space<vmem>>, vector<16x512xf32>,
    %c0_27 = arith.constant 0 : index
    %c0_28 = arith.constant 0 : index
    %58 = vector.load %arg10[%c0_27, %c0_28] : memref<96x512xf32, #tpu.memory_space<vmem>>, vector<48x512xf32>
    %cst_29 = arith.constant dense<0.000000e+00> : vector<32x512xf32>
    %59 = tpu.matmul %46, %58, %cst_29 {dimension_numbers = #tpu.dot_dimension_numbers<[1], [0], [0], [1], [0, 0, 1, 1], [], []>} : vector<32x48xf32>, vector<48x512xf32>, vector<32x512xf32> -> vector<32x512xf32>
    %c0_30 = arith.constant 0 : index
    %c0_31 = arith.constant 0 : index
    %60 = vector.load %arg4[%c0_30, %c0_31] : memref<32x1xf32, #tpu.memory_space<vmem>>, vector<32x1xf32>
    %61 = vector.broadcast %60 : vector<32x1xf32> to vector<32x512xf32>
    %62 = arith.addf %59, %61 : vector<32x512xf32>
    %cst_32 = arith.constant 0.707106769 : f32
    %63 = vector.broadcast %cst_32 : f32 to vector<32x512xf32>
    %64 = arith.mulf %62, %63 : vector<32x512xf32>
    %65 = math.absf %64 : vector<32x512xf32>
    %cst_33 = arith.constant 0.327591091 : f32
    %66 = vector.broadcast %cst_33 : f32 to vector<32x512xf32>
    %67 = arith.mulf %66, %65 : vector<32x512xf32>
    %cst_34 = arith.constant 1.000000e+00 : f32
    %68 = vector.broadcast %cst_34 : f32 to vector<32x512xf32>
    %69 = arith.addf %68, %67 : vector<32x512xf32>
    %70 = tpu.reciprocal %69 {approx = true} : vector<32x512xf32> -> vector<32x512xf32>
    %cst_35 = arith.constant 1.06140542 : f32
    %71 = vector.broadcast %cst_35 : f32 to vector<32x512xf32>
    %72 = arith.mulf %71, %70 : vector<32x512xf32>
    %cst_36 = arith.constant -1.45315206 : f32
    %73 = vector.broadcast %cst_36 : f32 to vector<32x512xf32>
    %74 = arith.addf %72, %73 : vector<32x512xf32>
    %75 = arith.mulf %74, %70 : vector<32x512xf32>
    %cst_37 = arith.constant 1.42141378 : f32
    %76 = vector.broadcast %cst_37 : f32 to vector<32x512xf32>
    %77 = arith.addf %75, %76 : vector<32x512xf32>
    %78 = arith.mulf %77, %70 : vector<32x512xf32>
    %cst_38 = arith.constant -0.284496725 : f32
    %79 = vector.broadcast %cst_38 : f32 to vector<32x512xf32>
    %80 = arith.addf %78, %79 : vector<32x512xf32>
    %81 = arith.mulf %80, %70 : vector<32x512xf32>
    %cst_39 = arith.constant 0.254829586 : f32
    %82 = vector.broadcast %cst_39 : f32 to vector<32x512xf32>
    %83 = arith.addf %81, %82 : vector<32x512xf32>
    %84 = arith.mulf %83, %70 : vector<32x512xf32>
    %cst_40 = arith.constant 0.000000e+00 : f32
    %85 = vector.broadcast %cst_40 : f32 to vector<32x512xf32>
    %86 = arith.subf %85, %65 : vector<32x512xf32>
    %87 = arith.mulf %86, %65 : vector<32x512xf32>
    %88 = math.exp %87 : vector<32x512xf32>
    %89 = arith.mulf %84, %88 : vector<32x512xf32>
    %cst_41 = arith.constant 1.000000e+00 : f32
    %90 = vector.broadcast %cst_41 : f32 to vector<32x512xf32>
    %91 = arith.subf %90, %89 : vector<32x512xf32>
    %cst_42 = arith.constant 0.000000e+00 : f32
    %92 = vector.broadcast %cst_42 : f32 to vector<32x512xf32>
    %93 = arith.cmpf oge, %64, %92 : vector<32x512xf32>
    %cst_43 = arith.constant 0.000000e+00 : f32
    %94 = vector.broadcast %cst_43 : f32 to vector<32x512xf32>
    %95 = arith.subf %94, %91 : vector<32x512xf32>
    %96 = arith.select %93, %91, %95 : vector<32x512xi1>, vector<32x512xf32>
    %cst_44 = arith.constant 5.000000e-01 : f32
    %97 = vector.broadcast %cst_44 : f32 to vector<32x512xf32>
    %98 = arith.mulf %97, %62 : vector<32x512xf32>
    %cst_45 = arith.constant 1.000000e+00 : f32
    %99 = vector.broadcast %cst_45 : f32 to vector<32x512xf32>
    %100 = arith.addf %99, %96 : vector<32x512xf32>
    %101 = arith.mulf %98, %100 : vector<32x512xf32>
    %c0_46 = arith.constant 0 : index
    %c0_47 = arith.constant 0 : index
    %102 = vector.load %arg5[%c0_46, %c0_47] : memref<32x96xf32, #tpu.memory_space<vmem>>, vector<32x96xf32>
    %c2_i32_48 = arith.constant 2 : i32
    %103 = tpu.dynamic_rotate %101 by %c2_i32_48 dim 1 : vector<32x512xf32>, i32 -> vector<32x512xf32>
    %104 = vector.extract_strided_slice %1 {offsets = [0, 0], sizes = [1, 512], strides = [1, 1]} : vector<3x512xf32> to vector<1x512xf32>
    %105 = vector.broadcast %104 : vector<1x512xf32> to vector<32x512xf32>
    %106 = arith.mulf %103, %105 : vector<32x512xf32>
    %c0_49 = arith.constant 0 : index
    %c0_50 = arith.constant 0 : index
    %107 = vector.load %arg10[%c0_49, %c0_50] : memref<96x512xf32, #tpu.memory_space<vmem>>, vector<32x512xf32>
    tpu.vector_store %arg10[%c0_49, %c0_50], %106 {strides = array<i32>} : memref<96x512xf32, #tpu.memory_space<vmem>>, vector<32x512xf32>,
    %c32_51 = arith.constant 32 : index
    %c0_52 = arith.constant 0 : index
    %108 = vector.load %arg10[%c32_51, %c0_52] : memref<96x512xf32, #tpu.memory_space<vmem>>, vector<32x512xf32>
    tpu.vector_store %arg10[%c32_51, %c0_52], %101 {strides = array<i32>} : memref<96x512xf32, #tpu.memory_space<vmem>>, vector<32x512xf32>,
    %c510_i32_53 = arith.constant 510 : i32
    %109 = tpu.dynamic_rotate %101 by %c510_i32_53 dim 1 : vector<32x512xf32>, i32 -> vector<32x512xf32>
    %110 = vector.extract_strided_slice %1 {offsets = [2, 0], sizes = [1, 512], strides = [1, 1]} : vector<3x512xf32> to vector<1x512xf32>
    %111 = vector.broadcast %110 : vector<1x512xf32> to vector<32x512xf32>
    %112 = arith.mulf %109, %111 : vector<32x512xf32>
    %c64 = arith.constant 64 : index
    %c0_54 = arith.constant 0 : index
    %113 = vector.load %arg10[%c64, %c0_54] : memref<96x512xf32, #tpu.memory_space<vmem>>, vector<32x512xf32>
    tpu.vector_store %arg10[%c64, %c0_54], %112 {strides = array<i32>} : memref<96x512xf32, #tpu.memory_space<vmem>>, vector<32x512xf32>,
    %c0_55 = arith.constant 0 : index
    %c0_56 = arith.constant 0 : index
    %114 = vector.load %arg10[%c0_55, %c0_56] : memref<96x512xf32, #tpu.memory_space<vmem>>, vector<96x512xf32>
    %cst_57 = arith.constant dense<0.000000e+00> : vector<32x512xf32>
    %115 = tpu.matmul %102, %114, %cst_57 {dimension_numbers = #tpu.dot_dimension_numbers<[1], [0], [0], [1], [0, 0, 1, 1], [], []>} : vector<32x96xf32>, vector<96x512xf32>, vector<32x512xf32> -> vector<32x512xf32>
    %c0_58 = arith.constant 0 : index
    %c0_59 = arith.constant 0 : index
    %116 = vector.load %arg6[%c0_58, %c0_59] : memref<32x1xf32, #tpu.memory_space<vmem>>, vector<32x1xf32>
    %117 = vector.broadcast %116 : vector<32x1xf32> to vector<32x512xf32>
    %118 = arith.addf %115, %117 : vector<32x512xf32>
    %119 = arith.addf %118, %6 : vector<32x512xf32>
    %c0_60 = arith.constant 0 : index
    %c0_61 = arith.constant 0 : index
    %120 = vector.load %arg9[%c0_60, %c0_61] : memref<32x512xf32, #tpu.memory_space<vmem>>, vector<32x512xf32>
    tpu.vector_store %arg9[%c0_60, %c0_61], %119 {strides = array<i32>} : memref<32x512xf32, #tpu.memory_space<vmem>>, vector<32x512xf32>,
    return
  }
  func.func @transform_0(%arg0: i32) -> (i32, i32) {
    %c0_i32 = arith.constant 0 : i32
    %c0_i32_0 = arith.constant 0 : i32
    %c0_i32_1 = arith.constant 0 : i32
    return %c0_i32, %c0_i32_0 : i32, i32
  }
  func.func @transform_1(%arg0: i32) -> (i32, i32) {
    %c0_i32 = arith.constant 0 : i32
    %c0_i32_0 = arith.constant 0 : i32
    return %c0_i32, %arg0 : i32, i32
  }
  func.func @transform_2(%arg0: i32) -> (i32, i32) {
    %c0_i32 = arith.constant 0 : i32
    %c0_i32_0 = arith.constant 0 : i32
    %c0_i32_1 = arith.constant 0 : i32
    return %c0_i32, %c0_i32_0 : i32, i32
  }
  func.func @transform_3(%arg0: i32) -> (i32, i32) {
    %c0_i32 = arith.constant 0 : i32
    %c0_i32_0 = arith.constant 0 : i32
    %c0_i32_1 = arith.constant 0 : i32
    return %c0_i32, %c0_i32_0 : i32, i32
  }
  func.func @transform_4(%arg0: i32) -> (i32, i32) {
    %c0_i32 = arith.constant 0 : i32
    %c0_i32_0 = arith.constant 0 : i32
    %c0_i32_1 = arith.constant 0 : i32
    return %c0_i32, %c0_i32_0 : i32, i32
  }
  func.func @transform_5(%arg0: i32) -> (i32, i32) {
    %c0_i32 = arith.constant 0 : i32
    %c0_i32_0 = arith.constant 0 : i32
    %c0_i32_1 = arith.constant 0 : i32
    return %c0_i32, %c0_i32_0 : i32, i32
  }
  func.func @transform_6(%arg0: i32) -> (i32, i32) {
    %c0_i32 = arith.constant 0 : i32
    %c0_i32_0 = arith.constant 0 : i32
    %c0_i32_1 = arith.constant 0 : i32
    return %c0_i32, %c0_i32_0 : i32, i32
  }
  func.func @transform_7(%arg0: i32) -> (i32, i32) {
    %c0_i32 = arith.constant 0 : i32
    %c0_i32_0 = arith.constant 0 : i32
    %c0_i32_1 = arith.constant 0 : i32
    return %c0_i32, %c0_i32_0 : i32, i32
  }
  func.func @transform_8(%arg0: i32) -> (i32, i32) {
    %c0_i32 = arith.constant 0 : i32
    %c0_i32_0 = arith.constant 0 : i32
    return %c0_i32, %arg0 : i32, i32
  }
}

</mosaic_0001>

<bundles_post_ra>
// kernel: tpu_custom_call.1
= control target key start
LH: loop header
LB: loop body
LE: loop exit
PB: predicated region body
PF: predicated region fallthrough
CT: control target
= control target key end

     0   :  { %13 = vsyncpa [#allocation4], 0  ;;  %s3946_s0 = inlined_call_operand.hbm [shape: f32[3,512], index: 0, kind: input, shape index: {}]   ;;  %s3947_s1 = inlined_call_operand.vmem [shape: f32[16,1024], index: 1, kind: input, shape index: {}]   ;;  %s3948_s2 = inlined_call_operand.hbm [shape: f32[32,48], index: 2, kind: input, shape index: {}]   ;;  %s3949_s3 = inlined_call_operand.vmem [shape: f32[32,1], index: 3, kind: input, shape index: {}]   ;;  %s3950_s4 = inlined_call_operand.vmem [shape: f32[32,96], index: 4, kind: input, shape index: {}]   ;;  %s3951_s5 = inlined_call_operand.vmem [shape: f32[32,1], index: 5, kind: input, shape index: {}]   ;;  %s3952_s6 = inlined_call_operand.vmem [shape: f32[32,16], index: 6, kind: input, shape index: {}]   ;;  %s3953_s7 = inlined_call_operand.vmem [shape: f32[32,1], index: 7, kind: input, shape index: {}]   ;;  %s3954_s8 = inlined_call_operand.hbm [shape: f32[32,1024], index: 8, kind: output, shape index: {}]  }
   0x1   :  { %14 = vsyncpa [#allocation8], 0 }
   0x2   :  { %15 = vsyncpa [#allocation5], 0 }
   0x3   :  { %17 = vsyncpa [#allocation5 + $0x1], 0  ;;  %s2733_s27 = smov 0   ;;  %s2735_s28 = smov 0  }
   0x4   :  { %s2737_s29 = smov 0   ;;  %s2739_s30 = smov 0  }
   0x5 LB: > { %s2754_s9 = sadd.s32 4294967295, %s2674_s30   ;;  %s2209_s10 = sadd.s32 4294967294, %s2674_s30   ;;  %s2674_s30 = sphi %s2739_s30, %s4065_s30   ;;  %s2670_s29 = sphi %s2737_s29, %s4064_s29   ;;  %s2666_s28 = sphi %s2735_s28, %s4063_s28   ;;  %s2662_s27 = sphi %s2733_s27, %s4062_s27  }
   0x6   : > { %s2758_s11 = sadd.s32 1, %s2674_s30   ;;  %s51_s12 = sadd.s32 1, %s2670_s29 }
   0x7   : > { %s48_s13 = ssub.s32 %s2674_s30, %s2758_s11  ;;  %p58_p0 = scmp.ne.s32.totalorder %s2670_s29, %s2666_s28 }
   0x8   : > { %p49_p1 = scmp.eq.s32.totalorder %s48_s13, 0  ;;  %p59_p2 = scmp.eq.s32.totalorder %s2674_s30, 0 }
   0x9   : > { %p214_p3 = scmp.eq.s32.totalorder %s2754_s9, 1  ;;  %p219_p4 = scmp.ne.s32.totalorder %s2666_s28, %s2662_s27 }
   0xa   : > { %s2770_s14 = scalar_select %p49_p1, %s2670_s29, %s51_s12  }
   0xb   : > { %p2772_p5 = por %p59_p2, %p58_p0  ;;  %p2776_p6 = por %p214_p3, %p58_p0 }
   0xc   : > { %3990 = sst [smem:[#allocation13_spill]] %s2770_s14  ;;  %p220_p7 = scmp.eq.s32.totalorder %s2209_s10, 1 }
   0xd   : > { %s3991_s15 = scalar_select %p2772_p5, 1, 0 }
   0xe   : > { %s3992_s16 = scalar_select %p2776_p6, 1, 0 }
   0xf   : > { %p2210_p8 = scmp.ge.s32.totalorder %s2674_s30, 1  ;;  %p227_p9 = scmp.lt.s32.totalorder %s2674_s30, 3 }
  0x10   : > { %p2782_p10 = por %p220_p7, %p219_p4  ;;  %p3955_p11 = scmp.eq.s32.totalorder %s2754_s9, 0 }
  0x11   : > { %p2787_p12 = pnand %p2210_p8, %p227_p9  ;;  %s2676_s19 = smov [#allocation3]  }
  0x12   : > { %s3993_s17 = scalar_select %p2782_p10, 1, 0 }
  0x13   : > { %s3994_s18 = scalar_select %p2787_p12, 1, 0 }
  0x14   : > { %s240_s20 = sshll.u32 %s2676_s19, 4  ;;  %p2391_p13 = pneg %p2787_p12  ;;  %s241_s20 = int_to_ptr.vmem [resolvable:$true] %s240_s20 }
  0x15   : > { %s2677_s21 = smov [#allocation7]   ;;  %s2548_s26 = scalar_lea.hbm %s3946_s0, 256 }
  0x16   : > { %s250_s22 = sshll.u32 %s2677_s21, 4  ;;  %p2795_p0 = pnand %p3955_p11, %p2391_p13  ;;  %s2799_s22 = int_to_ptr.vmem [resolvable:$true] %s250_s22 }
  0x17   : > { %p2549_p1 = scmp.ne.s32.totalorder %s3946_s0, %s2548_s26  ;;  %p2555_p7 = scmp.lt.u32.totalorder %s2548_s26, %s3946_s0 }
  0x18   : > { %p2550_p2 = pneg %p2795_p0 }
  0x1a   : > { %p2551_p3 = pnand %p2550_p2, %p2549_p1 }
  0x1c   : > { %p2552_p4 = pneg %p2551_p3 }
  0x1e   : > { %p2557_p8 = pnand %p2555_p7, %p2552_p4 }
  0x20   : > { %2560 = shalt.err (!%p2557_p8)
}
  0x21   : > { %s2561_s21 = scalar_lea.vmem %s241_s20, 256  ;;  %p2569_p10 = scmp.lt.s32.totalorder %s241_s20, %s241_s20 }
  0x22   : > { %p2562_p9 = scmp.ne.s32.totalorder %s241_s20, %s2561_s21  ;;  %p2570_p6 = scmp.lt.s32.totalorder %s2561_s21, %s2561_s21 }
  0x24   : > { %p2564_p13 = pnand %p2562_p9, %p2550_p2  ;;  %p2571_p12 = por %p2570_p6, %p2569_p10 }
  0x26   : > { %p2565_p11 = pneg %p2564_p13 }
  0x28   : > { %p2572_p5 = pnand %p2571_p12, %p2565_p11 }
  0x2a   : > { %2575 = shalt.err (!%p2572_p5)
}
  0x2b   : > { %2394 = dma.hbm_to_vmem [thread:$0]  (!%p2795_p0), %s3946_s0, 256, %s241_s20, [#allocation4]  }
  0x2c   : > { %s2576_s12 = scalar_lea.hbm %s3948_s2, 512 }
  0x2d   : > { %p2577_p1 = scmp.ne.s32.totalorder %s3948_s2, %s2576_s12  ;;  %p2583_p5 = scmp.lt.u32.totalorder %s2576_s12, %s3948_s2 }
  0x2f   : > { %p2579_p6 = pnand %p2577_p1, %p2550_p2 }
  0x31   : > { %p2580_p10 = pneg %p2579_p6 }
  0x33   : > { %p2585_p11 = pnand %p2583_p5, %p2580_p10 }
  0x35   : > { %2588 = shalt.err (!%p2585_p11)
}
  0x36   : > { %s2589_s20 = scalar_lea.vmem %s2799_s22, 512  ;;  %p2597_p7 = scmp.lt.s32.totalorder %s2799_s22, %s2799_s22 }
  0x37   : > { %p2590_p12 = scmp.ne.s32.totalorder %s2799_s22, %s2589_s20  ;;  %p2598_p8 = scmp.lt.s32.totalorder %s2589_s20, %s2589_s20 }
  0x39   : > { %p2592_p3 = pnand %p2590_p12, %p2550_p2  ;;  %p2599_p9 = por %p2598_p8, %p2597_p7 }
  0x3b   : > { %p2593_p4 = pneg %p2592_p3 }
  0x3d   : > { %p2600_p13 = pnand %p2599_p9, %p2593_p4 }
  0x3f   : > { %2603 = shalt.err (!%p2600_p13)
}
  0x40   : > { %s2678_s14 = smov 128   ;;  %s2679_s24 = smov 8  }
  0x41   : > { %2397 = dma.hbm_to_vmem [thread:$0]  (!%p2795_p0), %s3948_s2, 512, %s2799_s22, [#allocation8], %s2678_s14, %s2678_s14, %s2679_s24  }
  0x42   : > { %p2213_p1 = scmp.ge.s32.totalorder %s2674_s30, 2 }
  0x43   : > { %p3996_p2 = scmp.ne.s32.totalorder (!%p2213_p1), %s3991_s15, 0 }
  0x44   : > { %275 = sbr.rel (%p2213_p1) target bundleno = 83 (0x53), region = 44 }
  0x4b   : > { %278 = sbr.rel (!%p3996_p2) target bundleno = 83 (0x53), region = 48  ;;  %s280_s10 = sand.u32 (%p3996_p2), 1, %s2670_s29  }
  0x4c   : > { %s2251_s12 = sshll.u32 (%p3996_p2), %s2674_s30, 5  ;;  %s2214_s13 = sshll.u32 (%p3996_p2), %s280_s10, 6 }
  0x4d   : > { %s285_s23 = scalar_lea.vmem (%p3996_p2), %s3947_s1, %s2251_s12  ;;  %s282_s22 = scalar_lea.vmem (%p3996_p2), [#allocation6], %s2214_s13 }
  0x4e   : > { %v298_v0 = vld [vmem:[%s285_s23] sm:$0xff] (%p3996_p2)  ;;  %v300_v1 = vld [vmem:[%s285_s23 + $0x8] sm:$0xff] (%p3996_p2)  ;;  %v302_v2 = vld [vmem:[%s285_s23 + $0x10] sm:$0xff] (%p3996_p2) }
  0x4f   : > { %299 = vst [vmem:[%s282_s22] sm:$0xff] (%p3996_p2), %v298_v0  ;;  %301 = vst [vmem:[%s282_s22 + $0x8] sm:$0xff] (%p3996_p2), %v300_v1  ;;  %v304_v3 = vld [vmem:[%s285_s23 + $0x18] sm:$0xff] (%p3996_p2)  ;;  %v306_v4 = vld [vmem:[%s285_s23 + $0x40] sm:$0xff] (%p3996_p2) }
  0x50   : > { %303 = vst [vmem:[%s282_s22 + $0x10] sm:$0xff] (%p3996_p2), %v302_v2  ;;  %v308_v5 = vld [vmem:[%s285_s23 + $0x48] sm:$0xff] (%p3996_p2)  ;;  %305 = vst [vmem:[%s282_s22 + $0x18] sm:$0xff] (%p3996_p2), %v304_v3  ;;  %v310_v6 = vld [vmem:[%s285_s23 + $0x50] sm:$0xff] (%p3996_p2) }
  0x51   : > { %307 = vst [vmem:[%s282_s22 + $0x20] sm:$0xff] (%p3996_p2), %v306_v4  ;;  %309 = vst [vmem:[%s282_s22 + $0x28] sm:$0xff] (%p3996_p2), %v308_v5  ;;  %v312_v7 = vld [vmem:[%s285_s23 + $0x58] sm:$0xff] (%p3996_p2) }
  0x52   : > { %311 = vst [vmem:[%s282_s22 + $0x30] sm:$0xff] %v310_v6  ;;  %313 = vst [vmem:[%s282_s22 + $0x38] sm:$0xff] %v312_v7 }
  0x53 PF: > { %p3997_p0 = scmp.ne.s32.totalorder %s3994_s18, 0 }
  0x55   : > { %322 = sbr.rel (%p3997_p0) target bundleno = 1014 (0x3f6), region = 71 }
  0x5c   : > { %p3998_p6 = scmp.eq.s32.totalorder %s2754_s9, 0 }
  0x5e   : > { %2649 = dma.done.wait (%p3998_p6), [#allocation4], 256   ;;  %p3999_p10 = pmov %p3998_p6 }
  0x5f   : > { %s2865_s15 = sand.u32 1, %s2666_s28   ;;  %p4000_p5 = pmov %p3998_p6 }
  0x60   : > { %2651 = vsyncadd (%p3999_p10), [#allocation4], 4294967040  ;;  %s2219_s20 = sshll.u32 %s2865_s15, 6 }
  0x61   : > { %s2868_s14 = scalar_lea.vmem [#allocation6], %s2219_s20 }
  0x62   : > { %2653 = dma.done.wait (%p4000_p5), [#allocation8], 512   ;;  %p4001_p11 = pmov %p4000_p5 }
  0x63   : > { %v2875_v8 = vld [vmem:[%s2868_s14 + $0x8] sm:$0xff]  ;;  %v2878_v9 = vld [vmem:[%s2868_s14] sm:$0xff]  ;;  %v2903_v23 = vld [vmem:[%s2868_s14 + $0x30] sm:$0xff]  ;;  %s2680_s18 = smov 2   ;;  %vm406_vm7 = vcmask 130048   ;;  %s2682_s12 = smov 126  }
  0x64   : > { %2655 = vsyncadd (%p4001_p11), [#allocation8], 4294966784  ;;  %v2881_v10 = vld [vmem:[%s2868_s14 + $0x28] sm:$0xff]  ;;  %v2884_v11 = vmul.f32 0.70710677, %v2875_v8  ;;  %v2893_v14 = vld [vmem:[%s2868_s14 + $0x20] sm:$0xff] }
  0x65   : > { %v2887_v12 = vmul.f32 0.70710677, %v2878_v9  ;;  %v2890_v13 = vmul.f32 0.70710677, %v2881_v10  ;;  %v2899_v18 = vmul.f32 0.70710677, %v2893_v14 }
  0x66   : > { %v606_v15 = vand.u32 2147483647, %v2884_v11  ;;  %v2906_v28 = vmul.f32 0.70710677, %v2903_v23  ;;  %v2909_v29 = vld [vmem:[%s2868_s14 + $0x10] sm:$0xff]  ;;  %v2912_v32 = vld [vmem:[%s2868_s14 + $0x38] sm:$0xff] }
  0x67   : > { %v605_v16 = vand.u32 2147483647, %v2887_v12  ;;  %v610_v17 = vand.u32 2147483647, %v2890_v13  ;;  %v609_v22 = vand.u32 2147483647, %v2899_v18 }
  0x68   : > { %v614_v19 = vmul.f32 0.3275911, %v606_v15  ;;  %v710_v30 = vsub.f32 0.0, %v606_v15  ;;  %v611_v34 = vand.u32 2147483647, %v2906_v28  ;;  %v2924_v45 = vld [vmem:[%s2868_s14 + $0x18] sm:$0xff] }
  0x69   : > { %v613_v20 = vmul.f32 0.3275911, %v605_v16  ;;  %v618_v21 = vmul.f32 0.3275911, %v610_v17  ;;  %v617_v26 = vmul.f32 0.3275911, %v609_v22 }
  0x6a   : > { %v622_v24 = vadd.f32 1.0, %v614_v19  ;;  %v709_v31 = vsub.f32 0.0, %v605_v16  ;;  %v714_v35 = vsub.f32 0.0, %v610_v17  ;;  %v2916_v36 = vmul.f32 0.70710677, %v2909_v29  ;;  %s2221_s10 = sshll.u32 %s2865_s15, 7 }
  0x6b   : > { %v621_v25 = vadd.f32 1.0, %v613_v20  ;;  %v626_v27 = vadd.f32 1.0, %v618_v21  ;;  %v625_v33 = vadd.f32 1.0, %v617_v26  ;;  %v619_v37 = vmul.f32 0.3275911, %v611_v34  ;;  %s3877_s13 = scalar_lea.vmem [#allocation9], %s2221_s10 }
  0x6c   : > { %2452 = vrcp.f32 %v622_v24  ;;  %v2919_v38 = vmul.f32 0.70710677, %v2912_v32  ;;  %v718_v39 = vmul.f32 %v710_v30, %v606_v15  ;;  %v717_v40 = vmul.f32 %v709_v31, %v605_v16  ;;  %s2119_s19 = sshll.u32 %s3877_s13, 4  ;;  %s2106_s22 = scalar_lea.sflag [#allocation5], %s2865_s15  ;;  %s3898_s19 = int_to_ptr.vmem [resolvable:$true] %s2119_s19 }
  0x6d   : > { %2454 = vrcp.f32 %v621_v25  ;;  %v607_v41 = vand.u32 2147483647, %v2916_v36  ;;  %v713_v42 = vsub.f32 0.0, %v609_v22  ;;  %v627_v43 = vadd.f32 1.0, %v619_v37  ;;  %s2604_s20 = scalar_lea.vmem %s3898_s19, 2048  ;;  %p4059_p3 = scmp.ne.s32.totalorder %s3992_s16, 0 }
  0x6e   : > { %2456 = vrcp.f32 %v626_v27  ;;  %v612_v44 = vand.u32 2147483647, %v2919_v38  ;;  %v722_v46 = vmul.f32 %v714_v35, %v610_v17  ;;  %v2927_v48 = vmul.f32 0.5, %v2875_v8  ;;  %p2605_p12 = scmp.ne.s32.totalorder %s3898_s19, %s2604_s20  ;;  %s2684_s14 = smov [#allocation9]  }
  0x6f   : > { %2458 = vrcp.f32 %v625_v33  ;;  %v615_v47 = vmul.f32 0.3275911, %v607_v41  ;;  %v715_v49 = vsub.f32 0.0, %v611_v34  ;;  %v727_v51 = vmul.f32 1.442695, %v718_v39  ;;  %s2608_s24 = sshll.u32 %s2684_s14, 4  ;;  %s2609_s24 = int_to_ptr.vmem [resolvable:$false] %s2608_s24 }
  0x70   : > { %2460 = vrcp.f32 %v627_v43  ;;  %v620_v50 = vmul.f32 0.3275911, %v612_v44  ;;  %v2930_v52 = vmul.f32 0.5, %v2878_v9  ;;  %v2933_v54 = vmul.f32 0.70710677, %v2924_v45  ;;  %p2606_p4 = pnand %p2605_p12, %p4059_p3  ;;  %s2610_s25 = scalar_lea.vmem %s2609_s24, 4096 }
  0x71   : > { %v623_v53 = vadd.f32 1.0, %v615_v47  ;;  %v725_v56 = vmul.f32 1.442695, %v717_v40  ;;  %v721_v57 = vmul.f32 %v713_v42, %v609_v22  ;;  %v711_v58 = vsub.f32 0.0, %v607_v41  ;;  %p2611_p8 = scmp.lt.s32.totalorder %s3898_s19, %s2609_s24  ;;  %p2612_p9 = scmp.lt.s32.totalorder %s2610_s25, %s2604_s20 }
  0x72   : > { %v628_v59 = vadd.f32 1.0, %v620_v50  ;;  %v735_v62 = vmul.f32 1.442695, %v722_v46  ;;  %v608_v63 = vand.u32 2147483647, %v2933_v54  ;;  %v723_v1 = vmul.f32 %v715_v49, %v611_v34  ;;  %p2607_p7 = pneg %p2606_p4 }
  0x73   : > { %2462 = vrcp.f32 %v623_v53  ;;  %v716_v2 = vsub.f32 0.0, %v612_v44  ;;  %v2943_v4 = vmul.f32 0.5, %v2881_v10  ;;  %v733_v15 = vmul.f32 1.442695, %v721_v57  ;;  %p2613_p13 = por %p2612_p9, %p2611_p8 }
  0x74   : > { %2464 = vrcp.f32 %v628_v59  ;;  %v616_v5 = vmul.f32 0.3275911, %v608_v63  ;;  %v719_v16 = vmul.f32 %v711_v58, %v607_v41  ;;  %v712_v17 = vsub.f32 0.0, %v608_v63 }
  0x75   : > { %2466 = vpow2.f32 %v727_v51  ;;  %v737_v25 = vmul.f32 1.442695, %v723_v1  ;;  %v724_v26 = vmul.f32 %v716_v2, %v612_v44  ;;  %v2960_v44 = vmul.f32 0.5, %v2893_v14  ;;  %p2614_p2 = pnand %p2613_p13, %p2607_p7 }
  0x76   : > { %v2935_v55 = vpop.eup %2452  ;;  %2468 = vpow2.f32 %v725_v56  ;;  %v624_v21 = vadd.f32 1.0, %v616_v5  ;;  %v729_v35 = vmul.f32 1.442695, %v719_v16  ;;  %v720_v37 = vmul.f32 %v712_v17, %v608_v63 }
  0x77   : > { %v2937_v60 = vpop.eup %2454  ;;  %v638_v61 = vmul.f32 1.0614054, %v2935_v55  ;;  %2470 = vpow2.f32 %v735_v62  ;;  %v739_v46 = vmul.f32 1.442695, %v724_v26  ;;  %vm758_vm0 = vcmp.ge.f32.partialorder %v2884_v11, 0.0 }
  0x78   : > { %v637_v0 = vmul.f32 1.0614054, %v2937_v60  ;;  %v2945_v6 = vpop.eup %2456  ;;  %2472 = vrcp.f32 %v624_v21  ;;  %v731_v59 = vmul.f32 1.442695, %v720_v37  ;;  %vm757_vm1 = vcmp.ge.f32.partialorder %v2887_v12, 0.0 }
  0x79   : > { %v646_v3 = vadd.f32 -1.4531521, %v638_v61  ;;  %v642_v20 = vmul.f32 1.0614054, %v2945_v6  ;;  %v2949_v22 = vpop.eup %2458  ;;  %2474 = vpow2.f32 %v733_v15  ;;  %vm762_vm2 = vcmp.ge.f32.partialorder %v2890_v13, 0.0 }
  0x7a   : > { %v645_v7 = vadd.f32 -1.4531521, %v637_v0  ;;  %v641_v31 = vmul.f32 1.0614054, %v2949_v22  ;;  %v2953_v33 = vpop.eup %2460  ;;  %2476 = vpow2.f32 %v737_v25  ;;  %vm761_vm3 = vcmp.ge.f32.partialorder %v2899_v18, 0.0 }
  0x7b   : > { %v654_v19 = vmul.f32 %v2935_v55, %v646_v3  ;;  %v650_v30 = vadd.f32 -1.4531521, %v642_v20  ;;  %v643_v42 = vmul.f32 1.0614054, %v2953_v33  ;;  %2478 = vpow2.f32 %v729_v35 }
  0x7c   : > { %v653_v24 = vmul.f32 %v2937_v60, %v645_v7  ;;  %v649_v41 = vadd.f32 -1.4531521, %v641_v31  ;;  %2480 = vpow2.f32 %v739_v46  ;;  %vm763_vm4 = vcmp.ge.f32.partialorder %v2906_v28, 0.0 }
  0x7d   : > { %v662_v27 = vadd.f32 1.4214138, %v654_v19  ;;  %v658_v40 = vmul.f32 %v2945_v6, %v650_v30  ;;  %v2962_v47 = vpop.eup %2462  ;;  %v651_v53 = vadd.f32 -1.4531521, %v643_v42  ;;  %2482 = vpow2.f32 %v731_v59 }
  0x7e   : > { %v661_v34 = vadd.f32 1.4214138, %v653_v24  ;;  %v657_v51 = vmul.f32 %v2949_v22, %v649_v41  ;;  %v2965_v56 = vpop.eup %2464  ;;  %v639_v58 = vmul.f32 1.0614054, %v2962_v47  ;;  %v787_v13 = vmul.f32 0.5, %v2903_v23 }
  0x7f   : > { %v670_v39 = vmul.f32 %v2935_v55, %v662_v27  ;;  %v666_v50 = vadd.f32 1.4214138, %v658_v40  ;;  %v2467_v61 = vpop.eup %2466  ;;  %v659_v1 = vmul.f32 %v2953_v33, %v651_v53  ;;  %v644_v5 = vmul.f32 1.0614054, %v2965_v56 }
  0x80   : > { %v669_v43 = vmul.f32 %v2937_v60, %v661_v34  ;;  %v665_v0 = vadd.f32 1.4214138, %v657_v51  ;;  %v647_v3 = vadd.f32 -1.4531521, %v639_v58  ;;  %v2469_v7 = vpop.eup %2468  ;;  %vm759_vm5 = vcmp.ge.f32.partialorder %v2916_v36, 0.0 }
  0x81   : > { %v678_v49 = vadd.f32 -0.28449672, %v670_v39  ;;  %v674_v63 = vmul.f32 %v2945_v6, %v666_v50  ;;  %v667_v19 = vadd.f32 1.4214138, %v659_v1  ;;  %v2471_v20 = vpop.eup %2470  ;;  %v652_v25 = vadd.f32 -1.4531521, %v644_v5 }
  0x82   : > { %v677_v57 = vadd.f32 -0.28449672, %v669_v43  ;;  %v673_v17 = vmul.f32 %v2949_v22, %v665_v0  ;;  %v655_v24 = vmul.f32 %v2962_v47, %v647_v3  ;;  %v2977_v26 = vpop.eup %2472  ;;  %vm764_vm6 = vcmp.ge.f32.partialorder %v2919_v38, 0.0 }
  0x83   : > { %v686_v62 = vmul.f32 %v2935_v55, %v678_v49  ;;  %v682_v16 = vadd.f32 -0.28449672, %v674_v63  ;;  %v675_v34 = vmul.f32 %v2953_v33, %v667_v19  ;;  %v2475_v35 = vpop.eup %2474  ;;  %v660_v40 = vmul.f32 %v2965_v56, %v652_v25 }
  0x84   : > { %v685_v2 = vmul.f32 %v2937_v60, %v677_v57  ;;  %v681_v31 = vadd.f32 -0.28449672, %v673_v17  ;;  %v663_v39 = vadd.f32 1.4214138, %v655_v24  ;;  %v640_v41 = vmul.f32 1.0614054, %v2977_v26  ;;  %v2477_v49 = vpop.eup %2476 }
  0x85   : > { %v694_v15 = vadd.f32 0.2548296, %v686_v62  ;;  %v690_v30 = vmul.f32 %v2945_v6, %v682_v16  ;;  %v668_v53 = vadd.f32 1.4214138, %v660_v40  ;;  %v2479_v63 = vpop.eup %2478  ;;  %vm760_vm8 = vcmp.ge.f32.partialorder %v2933_v54, 0.0  ;;  %v379_v54 = vld [vmem:[%s3952_s6 + $0x8] sm:$0xff] }
  0x86   : > { %v693_v21 = vadd.f32 0.2548296, %v685_v2  ;;  %v689_v46 = vmul.f32 %v2949_v22, %v681_v31  ;;  %v671_v51 = vmul.f32 %v2962_v47, %v663_v39  ;;  %v2481_v16 = vpop.eup %2480  ;;  %vm1023_vm11 = vcmask 392192  }
  0x87   : > { %v702_v27 = vmul.f32 %v2935_v55, %v694_v15  ;;  %v698_v43 = vadd.f32 0.2548296, %v690_v30  ;;  %v683_v55 = vadd.f32 -0.28449672, %v675_v34  ;;  %v676_v1 = vmul.f32 %v2965_v56, %v668_v53  ;;  %v2483_v31 = vpop.eup %2482 }
  0x88   : > { %v701_v37 = vmul.f32 %v2937_v60, %v693_v21  ;;  %v648_v60 = vadd.f32 -1.4531521, %v640_v41  ;;  %v697_v59 = vadd.f32 0.2548296, %v689_v46  ;;  %v679_v0 = vadd.f32 -0.28449672, %v671_v51 }
  0x89   : > { %v742_v42 = vmul.f32 %v2467_v61, %v702_v27  ;;  %v706_v58 = vmul.f32 %v2945_v6, %v698_v43  ;;  %v691_v62 = vmul.f32 %v2953_v33, %v683_v55  ;;  %v684_v19 = vadd.f32 -0.28449672, %v676_v1 }
  0x8a   : > { %v741_v50 = vmul.f32 %v2469_v7, %v701_v37  ;;  %v656_v2 = vmul.f32 %v2977_v26, %v648_v60  ;;  %v705_v7 = vmul.f32 %v2949_v22, %v697_v59  ;;  %v687_v6 = vmul.f32 %v2962_v47, %v679_v0 }
  0x8b   : > { %v750_v57 = vsub.f32 1.0, %v742_v42  ;;  %v746_v5 = vmul.f32 %v2471_v20, %v706_v58  ;;  %v699_v15 = vadd.f32 0.2548296, %v691_v62  ;;  %v692_v37 = vmul.f32 %v2965_v56, %v684_v19 }
  0x8c   : > { %v749_v61 = vsub.f32 1.0, %v741_v50  ;;  %v664_v21 = vadd.f32 1.4214138, %v656_v2  ;;  %v745_v27 = vmul.f32 %v2475_v35, %v705_v7  ;;  %v695_v22 = vadd.f32 0.2548296, %v687_v6 }
  0x8d   : > { %v766_v3 = vsub.f32 0.0, %v750_v57  ;;  %v754_v25 = vsub.f32 1.0, %v746_v5  ;;  %v707_v30 = vmul.f32 %v2953_v33, %v699_v15  ;;  %v700_v35 = vadd.f32 0.2548296, %v692_v37 }
  0x8e   : > { %v765_v17 = vsub.f32 0.0, %v749_v61  ;;  %v753_v41 = vsub.f32 1.0, %v745_v27  ;;  %v703_v11 = vmul.f32 %v2962_v47, %v695_v22  ;;  %v672_v33 = vmul.f32 %v2977_v26, %v664_v21  ;;  %v1000_v22 = vld [vmem:[%s3949_s3 + $0x8] sm:$0xff] }
  0x8f   : > { %v774_v24 = vsel %vm758_vm0, %v750_v57, %v766_v3  ;;  %v770_v40 = vsub.f32 0.0, %v754_v25  ;;  %v747_v42 = vmul.f32 %v2477_v49, %v707_v30  ;;  %v708_v51 = vmul.f32 %v2965_v56, %v700_v35  ;;  %v376_v35 = vld [vmem:[#allocation3] sm:$0x77] }
  0x90   : > { %v790_v34 = vadd.f32 1.0, %v774_v24  ;;  %v773_v20 = vsel %vm757_vm1, %v749_v61, %v765_v17  ;;  %v769_v55 = vsub.f32 0.0, %v753_v41  ;;  %v680_v47 = vadd.f32 -0.28449672, %v672_v33 }
  0x91   : > { %v789_v39 = vadd.f32 1.0, %v773_v20  ;;  %v778_v12 = vsel %vm762_vm2, %v754_v25, %v770_v40  ;;  %v755_v50 = vsub.f32 1.0, %v747_v42  ;;  %v748_v59 = vmul.f32 %v2481_v16, %v708_v51  ;;  %v380_v25 = vld [vmem:[%s3952_s6 + $0x10] sm:$0xff]  ;;  %v999_v20 = vld [vmem:[%s3949_s3] sm:$0xff]  ;;  %v1002_v40 = vld [vmem:[%s3949_s3 + $0x18] sm:$0xff] }
  0x92   : > { %v3003_v43 = vmul.f32 %v790_v34, %v2927_v48  ;;  %v794_v49 = vadd.f32 1.0, %v778_v12  ;;  %v743_v48 = vmul.f32 %v2479_v63, %v703_v11  ;;  %v688_v56 = vmul.f32 %v2977_v26, %v680_v47 }
  0x93   : > { %v3008_v46 = vmul.f32 %v789_v39, %v2930_v52  ;;  %v777_v52 = vsel %vm761_vm3, %v753_v41, %v769_v55  ;;  %v771_v53 = vsub.f32 0.0, %v755_v50  ;;  %v783_v0 = vmul.f32 0.5, %v2909_v29  ;;  %v1001_v39 = vld [vmem:[%s3949_s3 + $0x10] sm:$0xff] }
  0x94   : > { %813 = vrot.lane.b32.xlu1 %v3003_v43, %s2680_s18  ;;  %v3021_v60 = vmul.f32 %v794_v49, %v2943_v4  ;;  %v793_v57 = vadd.f32 1.0, %v777_v52  ;;  %v751_v58 = vsub.f32 1.0, %v743_v48  ;;  %v756_v4 = vsub.f32 1.0, %v748_v59  ;;  %v377_v59 = vld [vmem:[#allocation3 + $0x8] sm:$0x77] }
  0x95   : > { %809 = vrot.lane.b32.xlu0 %v3008_v46, %s2680_s18  ;;  %v779_v62 = vsel %vm763_vm4, %v755_v50, %v771_v53  ;;  %v696_v1 = vadd.f32 0.2548296, %v688_v56  ;;  %v2253_v3 = vpack.c.bf16 %v2881_v10, %v2875_v8  ;;  %v788_v5 = vmul.f32 0.5, %v2912_v32 }
  0x96   : > { %v3030_v18 = vmul.f32 %v793_v57, %v2960_v44  ;;  %v795_v63 = vadd.f32 1.0, %v779_v62  ;;  %v767_v61 = vsub.f32 0.0, %v751_v58  ;;  %v772_v2 = vsub.f32 0.0, %v756_v4 }
  0x97   : > { %v704_v7 = vmul.f32 %v2977_v26, %v696_v1  ;;  %2254 = vmatprep.subr.bf16.mxu0 %v2253_v3  ;;  %v2255_v15 = vpack.c.bf16 %v2893_v14, %v2878_v9  ;;  %v2257_v8 = vpack.c.bf16 %v2912_v32, %v2924_v45  ;;  %v2259_v10 = vpack.c.bf16 %v2903_v23, %v2909_v29  ;;  %v378_v9 = vld [vmem:[%s3952_s6] sm:$0xff] }
  0x98   : > { %815 = vrot.lane.b32.xlu1 %v3021_v60, %s2680_s18  ;;  %v3036_v28 = vmul.f32 %v795_v63, %v787_v13  ;;  %v775_v36 = vsel %vm759_vm5, %v751_v58, %v767_v61  ;;  %v780_v38 = vsel %vm764_vm6, %v756_v4, %v772_v2  ;;  %v3958_v14 = vmov 0.0  }
  0x99   : > { %811 = vrot.lane.b32.xlu0 %v3030_v18, %s2680_s18  ;;  %v791_v44 = vadd.f32 1.0, %v775_v36  ;;  %v796_v17 = vadd.f32 1.0, %v780_v38  ;;  %v744_v6 = vmul.f32 %v2483_v31, %v704_v7  ;;  %2256 = vmatpush1.bf16.msra.mxu0 %v2255_v15  ;;  %v784_v29 = vmul.f32 0.5, %v2924_v45  ;;  %v381_v31 = vld [vmem:[%s3952_s6 + $0x18] sm:$0xff] }
  0x9a   : > { %2258 = vmatprep.subr.bf16.mxu1 %v2257_v8  ;;  %483 = vmatprep.mubr.f32.mxu0 %v3958_v14  ;;  %v2265_v24 = vpack.c.bf16 %v3021_v60, %v3003_v43  ;;  %v2267_v27 = vpack.c.bf16 %v3030_v18, %v3008_v46  ;;  %v2683_v37 = vmov 0   ;;  %v825_v41 = vlaneseq }
  0x9b   : > { %v3046_v16 = vmul.f32 %v791_v44, %v783_v0  ;;  %v3054_v26 = vmul.f32 %v796_v17, %v788_v5  ;;  %v752_v19 = vsub.f32 1.0, %v744_v6  ;;  %2260 = vmatpush1.bf16.msra.mxu1 %v2259_v10  ;;  %572 = vmatprep.mubr.f32.mxu1 %v3958_v14 }
  0x9c   : > { %819 = vrot.lane.b32.xlu1 %v3036_v28, %s2680_s18  ;;  %2222 = vmatmul.mubr.msk.f32.vlgmr.msra.gmra.mrb[0].mxu0 %vm406_vm7, %v378_v9  ;;  %v839_v42 = vshrl.u32 %v825_v41, 7  ;;  %v3130_v33 = vand.u32 127, %v825_v41 }
  0x9d   : > { %817 = vrot.lane.b32.xlu0 %v3046_v16, %s2680_s18  ;;  %v768_v23 = vsub.f32 0.0, %v752_v19  ;;  %489 = vmatprep.mubr.f32.mxu0 %v3958_v14  ;;  %v2279_v34 = vpack.c.bf16 %v3036_v28, %v3046_v16 }
  0x9e   : > { %2226 = vmatmul.mubr.msk.f32.vlgmr.msra.gmra.mrb[0].mxu1 %vm406_vm7, %v378_v9  ;;  %2450 = vset.pattern.permute.xlu0 %v2683_v37  ;;  %v844_v11 = vsub.s32 4, %v839_v42  ;;  %4002 = vst [vmem:[#allocation14_spill] sm:$0xff] %v3130_v33  ;;  %v840_v55 = vsub.s32 0, %v839_v42  ;;  %vm827_vm9 = vcmp.lt.s32.totalorder %v3130_v33, 2  ;;  %v925_v8 = vsub.s32 2, %v839_v42 }
  0x9f   : > { %v776_v32 = vsel %vm760_vm8, %v752_v19, %v768_v23  ;;  %578 = vmatprep.mubr.f32.mxu1 %v3958_v14  ;;  %2451 = vset.pattern.permute.xlu1 %v2683_v37  ;;  %v929_v10 = vsub.s32 6, %v839_v42  ;;  %vm914_vm10 = vcmp.lt.s32.totalorder %v3130_v33, 126 }
  0xa0   : > { %823 = vrot.lane.b32.xlu1 %v3054_v26, %s2680_s18  ;;  %v792_v21 = vadd.f32 1.0, %v776_v32  ;;  %2223 = vmatmul.mubr.msk.f32.gmra.mrb[2].mxu0 %vm406_vm7, %v379_v54  ;;  %v845_v50 = vrot.slane %v376_v35, %v844_v11  ;;  %v841_v56 = vrot.slane %v376_v35, %v840_v55  ;;  %v853_v63 = vrot.slane %v377_v59, %v844_v11 }
  0xa1   : > { %495 = vmatprep.mubr.f32.mxu0 %v3958_v14  ;;  %v849_v61 = vrot.slane %v377_v59, %v840_v55  ;;  %v930_v37 = vrot.slane %v376_v35, %v929_v10 }
  0xa2   : > { %v3074_v45 = vmul.f32 %v792_v21, %v784_v29  ;;  %2227 = vmatmul.mubr.msk.f32.gmra.mrb[2].mxu1 %vm406_vm7, %v379_v54  ;;  %v3133_v48 = vrot.slane %v845_v50, %v840_v55  ;;  %v3141_v1 = vrot.slane %v841_v56, %v840_v55  ;;  %v3143_v36 = vrot.slane %v853_v63, %v840_v55 }
  0xa3   : > { %584 = vmatprep.mubr.f32.mxu1 %v3958_v14  ;;  %v3145_v2 = vrot.slane %v849_v61, %v840_v55  ;;  %v3171_v11 = vrot.slane %v930_v37, %v925_v8  ;;  %v938_v55 = vrot.slane %v377_v59, %v929_v10  ;;  %v806_v61 = vld [vmem:[#allocation7 + $0x8] sm:$0xff] }
  0xa4   : > { %900 = vrot.lane.b32.xlu1 %v3030_v18, %s2682_s12  ;;  %821 = vrot.lane.b32.xlu0 %v3074_v45, %s2680_s18  ;;  %v2277_v30 = vpack.c.bf16 %v3054_v26, %v3074_v45  ;;  %4003 = vst [vmem:[#allocation15_spill] sm:$0xff] %v3133_v48  ;;  %4004 = vst [vmem:[#allocation16_spill] sm:$0xff] %v3141_v1 }
  0xa5   : > { %2224 = vmatmul.mubr.msk.f32.gmra.mrb[4].mxu0 %vm406_vm7, %v380_v25  ;;  %4005 = vst [vmem:[#allocation17_spill] sm:$0xff] %v3143_v36  ;;  %4006 = vst [vmem:[#allocation18_spill] sm:$0xff] %v3145_v2 }
  0xa6   : > { %501 = vmatprep.mubr.f32.mxu0 %v3958_v14  ;;  %2228 = vmatmul.mubr.msk.f32.gmra.mrb[4].mxu1 %vm406_vm7, %v380_v25  ;;  %4008 = vst [vmem:[#allocation20_spill] sm:$0xff] %v3171_v11 }
  0xa7   : > { %590 = vmatprep.mubr.f32.mxu1 %v3958_v14 }
  0xa8   : > { %904 = vrot.lane.b32.xlu1 %v3021_v60, %s2682_s12  ;;  %898 = vrot.lane.b32.xlu0 %v3008_v46, %s2682_s12 }
  0xa9   : > { %2225 = vmatmul.mubr.msk.f32.gmra.mrb[6].mxu0 %vm406_vm7, %v381_v31 }
  0xaa   : > { %1100 = vmatprep.mubr.f32.mxu0 %v3958_v14  ;;  %2229 = vmatmul.mubr.msk.f32.gmra.mrb[6].mxu1 %vm406_vm7, %v381_v31 }
  0xab   : > { %1189 = vmatprep.mubr.f32.mxu1 %v3958_v14 }
  0xac   : > { %908 = vrot.lane.b32.xlu1 %v3036_v28, %s2682_s12  ;;  %902 = vrot.lane.b32.xlu0 %v3003_v43, %s2682_s12 }
  0xb0   : > { %912 = vrot.lane.b32.xlu1 %v3054_v26, %s2682_s12  ;;  %906 = vrot.lane.b32.xlu0 %v3046_v16, %s2682_s12 }
  0xb4   : > { %910 = vrot.lane.b32.xlu0 %v3074_v45, %s2682_s12  ;;  %1010 = vperm.xlu1 %2451, %v1000_v22   ;;  %v926_v22 = vrot.slane %v376_v35, %v925_v8 }
  0xb6   : > { %v3169_v41 = vrot.slane %v926_v22, %v925_v8 }
  0xb8   : > { %1005 = vperm.xlu0 %2450, %v999_v20   ;;  %1015 = vperm.xlu1 %2451, %v1001_v39   ;;  %4007 = vst [vmem:[#allocation19_spill] sm:$0xff] %v3169_v41 }
  0xbc   : > { %1020 = vperm.xlu0 %2450, %v1002_v40  }
 0x106   : > { %v814_v12 = vpop.permute.xlu1 %813 }
 0x107   : > { %v810_v49 = vpop.permute.xlu0 %809 }
 0x108   : > { %v832_v47 = vsel %vm827_vm9, %v810_v49, %v814_v12 }
 0x109   : > { %v875_v13 = vmul.f32 %v3133_v48, %v832_v47 }
 0x10a   : > { %v816_v51 = vpop.permute.xlu1 %815 }
 0x10b   : > { %v812_v52 = vpop.permute.xlu0 %811 }
 0x10c   : > { %v833_v53 = vsel %vm827_vm9, %v812_v52, %v816_v51 }
 0x10d   : > { %v879_v57 = vmul.f32 %v3133_v48, %v833_v53 }
 0x10e   : > { %v820_v58 = vpop.permute.xlu1 %819 }
 0x10f   : > { %v2261_v62 = vpack.c.bf16 %v879_v57, %v875_v13  ;;  %v818_v0 = vpop.permute.xlu0 %817  ;;  %v831_v7 = vsel %vm827_vm9, %v816_v51, %v820_v58 }
 0x110   : > { %v830_v38 = vsel %vm827_vm9, %v814_v12, %v818_v0  ;;  %v880_v19 = vmul.f32 %v3145_v2, %v831_v7  ;;  %v934_v12 = vrot.slane %v377_v59, %v925_v8 }
 0x111   : > { %2262 = vmatprep.subr.bf16.mxu0 %v2261_v62  ;;  %v876_v9 = vmul.f32 %v3145_v2, %v830_v38  ;;  %v805_v62 = vld [vmem:[#allocation7] sm:$0xff] }
 0x112   : > { %v824_v4 = vpop.permute.xlu1 %823 }
 0x113   : > { %v829_v3 = vsel %vm827_vm9, %v820_v58, %v824_v4  ;;  %v835_v44 = vsel %vm827_vm9, %v824_v4, %v812_v52  ;;  %v2275_v39 = vpack.c.bf16 %v880_v19, %v876_v9  ;;  %v807_v4 = vld [vmem:[#allocation7 + $0x10] sm:$0xff] }
 0x114   : > { %v878_v15 = vmul.f32 %v3141_v1, %v835_v44  ;;  %v881_v17 = vmul.f32 %v3143_v36, %v829_v3 }
 0x116   : > { %v901_v5 = vpop.permute.xlu1 %900  ;;  %v822_v6 = vpop.permute.xlu0 %821 }
 0x117   : > { %v828_v23 = vsel %vm827_vm9, %v818_v0, %v822_v6  ;;  %v834_v29 = vsel %vm827_vm9, %v822_v6, %v810_v49  ;;  %v3192_v49 = vrot.slane %v938_v55, %v925_v8  ;;  %v808_v0 = vld [vmem:[#allocation7 + $0x18] sm:$0xff] }
 0x118   : > { %v874_v54 = vmul.f32 %v3141_v1, %v834_v29  ;;  %v877_v21 = vmul.f32 %v3143_v36, %v828_v23 }
 0x119   : > { %4010 = vst [vmem:[#allocation22_spill] sm:$0xff] %v3192_v49 }
 0x11a   : > { %v905_v32 = vpop.permute.xlu1 %904  ;;  %v2263_v25 = vpack.c.bf16 %v878_v15, %v874_v54  ;;  %v899_v31 = vpop.permute.xlu0 %898  ;;  %v2273_v20 = vpack.c.bf16 %v881_v17, %v877_v21 }
 0x11b   : > { %v920_v35 = vsel %vm914_vm10, %v901_v5, %v905_v32 }
 0x11c   : > { %2264 = vmatpush1.bf16.msra.mxu0 %v2263_v25  ;;  %2274 = vmatprep.subr.bf16.mxu1 %v2273_v20  ;;  %v963_v26 = vmul.f32 %v3169_v41, %v920_v35 }
 0x11d   : > { %2276 = vmatpush1.bf16.msra.mxu1 %v2275_v39  ;;  %2266 = vmatprep.subr.bf16.mxu0 %v2265_v24 }
 0x11e   : > { %v909_v40 = vpop.permute.xlu1 %908  ;;  %v903_v42 = vpop.permute.xlu0 %902  ;;  %2278 = vmatprep.subr.bf16.mxu1 %v2277_v30  ;;  %v3190_v30 = vrot.slane %v934_v12, %v925_v8 }
 0x11f   : > { %v918_v50 = vsel %vm914_vm10, %v905_v32, %v909_v40  ;;  %v919_v43 = vsel %vm914_vm10, %v899_v31, %v903_v42 }
 0x120   : > { %2268 = vmatpush1.bf16.msra.mxu0 %v2267_v27  ;;  %v964_v45 = vmul.f32 %v3171_v11, %v918_v50  ;;  %4009 = vst [vmem:[#allocation21_spill] sm:$0xff] %v3190_v30  ;;  %v959_v51 = vmul.f32 %v3169_v41, %v919_v43 }
 0x121   : > { %2280 = vmatpush1.bf16.msra.mxu1 %v2279_v34 }
 0x122   : > { %v913_v60 = vpop.permute.xlu1 %912  ;;  %v907_v24 = vpop.permute.xlu0 %906  ;;  %v2271_v53 = vpack.c.bf16 %v963_v26, %v959_v51 }
 0x123   : > { %v917_v46 = vsel %vm914_vm10, %v903_v42, %v907_v24  ;;  %v916_v18 = vsel %vm914_vm10, %v909_v40, %v913_v60  ;;  %v922_v28 = vsel %vm914_vm10, %v913_v60, %v901_v5 }
 0x124   : > { %v960_v16 = vmul.f32 %v3171_v11, %v917_v46  ;;  %v965_v27 = vmul.f32 %v3190_v30, %v916_v18  ;;  %v966_v34 = vmul.f32 %v3192_v49, %v922_v28 }
 0x126   : > { %v911_v47 = vpop.permute.xlu0 %910  ;;  %v2269_v52 = vpack.c.bf16 %v964_v45, %v960_v16 }
 0x127   : > { %v915_v13 = vsel %vm914_vm10, %v907_v24, %v911_v47  ;;  %v921_v57 = vsel %vm914_vm10, %v911_v47, %v899_v31 }
 0x128   : > { %v961_v58 = vmul.f32 %v3190_v30, %v915_v13  ;;  %v962_v59 = vmul.f32 %v3192_v49, %v921_v57  ;;  %2270 = vmatprep.subr.bf16.mxu0 %v2269_v52 }
 0x129   : > { %2272 = vmatpush1.bf16.msra.mxu0 %v2271_v53 }
 0x12a   : > { %v2283_v56 = vpack.c.bf16 %v965_v27, %v961_v58  ;;  %v2281_v63 = vpack.c.bf16 %v966_v34, %v962_v59 }
 0x12c   : > { %2230 = vmatmul.mubr.msk.f32.vlgmr.msra.gmra.mrb[8].mxu0 %vm1023_vm11, %v805_v62  ;;  %2282 = vmatprep.subr.bf16.mxu1 %v2281_v63 }
 0x12d   : > { %2284 = vmatpush1.bf16.msra.mxu1 %v2283_v56  ;;  %1106 = vmatprep.mubr.f32.mxu0 %v3958_v14 }
 0x130   : > { %2231 = vmatmul.mubr.msk.f32.gmra.mrb[10].mxu0 %vm1023_vm11, %v806_v61  ;;  %2234 = vmatmul.mubr.msk.f32.vlgmr.msra.gmra.mrb[8].mxu1 %vm1023_vm11, %v805_v62 }
 0x131   : > { %1112 = vmatprep.mubr.f32.mxu0 %v3958_v14  ;;  %1195 = vmatprep.mubr.f32.mxu1 %v3958_v14 }
 0x133   : > { %v3228_v17 = vpop.permute.xlu1 %1010 }
 0x134   : > { %2232 = vmatmul.mubr.msk.f32.gmra.mrb[12].mxu0 %vm1023_vm11, %v807_v4  ;;  %2235 = vmatmul.mubr.msk.f32.gmra.mrb[10].mxu1 %vm1023_vm11, %v806_v61 }
 0x135   : > { %1118 = vmatprep.mubr.f32.mxu0 %v3958_v14  ;;  %1201 = vmatprep.mubr.f32.mxu1 %v3958_v14 }
 0x137   : > { %v1006_v3 = vpop.permute.xlu0 %1005  ;;  %v3263_v56 = vpop.permute.xlu1 %1015 }
 0x138   : > { %2233 = vmatmul.mubr.msk.f32.gmra.mrb[14].mxu0 %vm1023_vm11, %v808_v0  ;;  %2236 = vmatmul.mubr.msk.f32.gmra.mrb[12].mxu1 %vm1023_vm11, %v807_v4 }
 0x139   : > { %1207 = vmatprep.mubr.f32.mxu1 %v3958_v14  ;;  %1959 = vmatprep.mubr.f32.mxu0 %v3958_v14 }
 0x13c   : > { %2237 = vmatmul.mubr.msk.f32.gmra.mrb[14].mxu1 %vm1023_vm11, %v808_v0 }
 0x13d   : > { %2048 = vmatprep.mubr.f32.mxu1 %v3958_v14 }
 0x1ff   : > { %v1102_v44 = vpop.f32.mrb[8].mxu0 }
 0x200   : > { %v1103_v5 = vadd.f32 %v1102_v44, %v1006_v3  ;;  %v1104_v7 = vpop.f32.mrb[9].mxu0 }
 0x201   : > { %v1105_v38 = vadd.f32 %v1104_v7, %v1006_v3 }
 0x202   : > { %v3226_v15 = vmul.f32 0.70710677, %v1103_v5  ;;  %v3252_v27 = vmul.f32 0.5, %v1103_v5 }
 0x203   : > { %v3230_v6 = vmul.f32 0.70710677, %v1105_v38  ;;  %v1108_v8 = vpop.f32.mrb[10].mxu0  ;;  %v1191_v10 = vpop.f32.mrb[8].mxu1  ;;  %v3256_v13 = vmul.f32 0.5, %v1105_v38 }
 0x204   : > { %v1230_v19 = vand.u32 2147483647, %v3226_v15  ;;  %v1109_v9 = vadd.f32 %v1108_v8, %v3228_v17  ;;  %v1192_v23 = vadd.f32 %v1191_v10, %v1006_v3  ;;  %v1110_v29 = vpop.f32.mrb[11].mxu0  ;;  %v1193_v32 = vpop.f32.mrb[9].mxu1  ;;  %vm1534_vm12 = vcmp.ge.f32.partialorder %v3226_v15, 0.0 }
 0x205   : > { %v1231_v54 = vand.u32 2147483647, %v3230_v6  ;;  %v1111_v40 = vadd.f32 %v1110_v29, %v3228_v17  ;;  %v1194_v45 = vadd.f32 %v1193_v32, %v1006_v3  ;;  %vm1535_vm0 = vcmp.ge.f32.partialorder %v3230_v6, 0.0 }
 0x206   : > { %v1246_v21 = vmul.f32 0.3275911, %v1230_v19  ;;  %v1438_v25 = vsub.f32 0.0, %v1230_v19  ;;  %v3235_v31 = vmul.f32 0.70710677, %v1109_v9  ;;  %v3259_v58 = vmul.f32 0.5, %v1109_v9 }
 0x207   : > { %v1247_v20 = vmul.f32 0.3275911, %v1231_v54  ;;  %v3237_v22 = vmul.f32 0.70710677, %v1192_v23  ;;  %v1439_v37 = vsub.f32 0.0, %v1231_v54  ;;  %v1114_v42 = vpop.f32.mrb[12].mxu0 }
 0x208   : > { %v1234_v39 = vand.u32 2147483647, %v3235_v31  ;;  %v1197_v12 = vpop.f32.mrb[10].mxu1  ;;  %v1116_v35 = vpop.f32.mrb[13].mxu0  ;;  %v1262_v43 = vadd.f32 1.0, %v1246_v21  ;;  %v1454_v60 = vmul.f32 %v1438_v25, %v1230_v19  ;;  %v1115_v3 = vadd.f32 %v1114_v42, %v3263_v56 }
 0x209   : > { %v1232_v55 = vand.u32 2147483647, %v3237_v22  ;;  %v3242_v50 = vpop.f32.mrb[11].mxu1  ;;  %v1263_v26 = vadd.f32 1.0, %v1247_v20  ;;  %v1455_v51 = vmul.f32 %v1439_v37, %v1231_v54  ;;  %v3246_v18 = vmul.f32 0.70710677, %v1111_v40 }
 0x20a   : > { %v1442_v46 = vsub.f32 0.0, %v1234_v39  ;;  %v1250_v34 = vmul.f32 0.3275911, %v1234_v39  ;;  %2484 = vrcp.f32 %v1262_v43  ;;  %v1470_v53 = vmul.f32 1.442695, %v1454_v60 }
 0x20b   : > { %v3244_v24 = vpop.f32.mrb[14].mxu0  ;;  %v3248_v28 = vpop.f32.mrb[12].mxu1  ;;  %v1440_v47 = vsub.f32 0.0, %v1232_v55  ;;  %v1235_v57 = vand.u32 2147483647, %v3246_v18  ;;  %2486 = vrcp.f32 %v1263_v26  ;;  %v3272_v8 = vadd.f32 %v1197_v12, %v3228_v17 }
 0x20c   : > { %v3250_v16 = vpop.f32.mrb[15].mxu0  ;;  %v3254_v52 = vpop.f32.mrb[13].mxu1  ;;  %v1248_v59 = vmul.f32 0.3275911, %v1232_v55  ;;  %v3261_v62 = vmul.f32 0.70710677, %v1194_v45  ;;  %v1458_v4 = vmul.f32 %v1442_v46, %v1234_v39  ;;  %2488 = vpow2.f32 %v1470_v53 }
 0x20d   : > { %v1472_v61 = vmul.f32 1.442695, %v1455_v51  ;;  %v1443_v0 = vsub.f32 0.0, %v1235_v57  ;;  %v1266_v5 = vadd.f32 1.0, %v1250_v34  ;;  %v1456_v7 = vmul.f32 %v1440_v47, %v1232_v55 }
 0x20e   : > { %v1233_v38 = vand.u32 2147483647, %v3261_v62  ;;  %v3274_v10 = vmul.f32 0.5, %v1192_v23  ;;  %v1251_v19 = vmul.f32 0.3275911, %v1235_v57  ;;  %v1264_v29 = vadd.f32 1.0, %v1248_v59 }
 0x20f   : > { %v3265_v63 = vpop.f32.mrb[14].mxu1  ;;  %v3276_v9 = vmul.f32 0.70710677, %v1115_v3  ;;  %v1459_v32 = vmul.f32 %v1443_v0, %v1235_v57  ;;  %v3279_v21 = vmul.f32 0.70710677, %v3272_v8  ;;  %2490 = vpow2.f32 %v1472_v61 }
 0x210   : > { %v3268_v44 = vpop.f32.mrb[15].mxu1  ;;  %v1441_v54 = vsub.f32 0.0, %v1233_v38  ;;  %v1478_v25 = vmul.f32 1.442695, %v1458_v4  ;;  %v3281_v20 = vmul.f32 0.5, %v1111_v40  ;;  %2492 = vrcp.f32 %v1266_v5 }
 0x211   : > { %v1238_v37 = vand.u32 2147483647, %v3276_v9  ;;  %v1474_v39 = vmul.f32 1.442695, %v1456_v7  ;;  %v1249_v42 = vmul.f32 0.3275911, %v1233_v38  ;;  %v3286_v60 = vadd.f32 %v1116_v35, %v3263_v56 }
 0x212   : > { %v1236_v23 = vand.u32 2147483647, %v3279_v21  ;;  %v1267_v12 = vadd.f32 1.0, %v1251_v19  ;;  %v1457_v55 = vmul.f32 %v1441_v54, %v1233_v38  ;;  %2494 = vrcp.f32 %v1264_v29 }
 0x213   : > { %v1446_v43 = vsub.f32 0.0, %v1238_v37  ;;  %v1480_v26 = vmul.f32 1.442695, %v1459_v32  ;;  %v1254_v51 = vmul.f32 0.3275911, %v1238_v37  ;;  %2496 = vpow2.f32 %v1478_v25 }
 0x214   : > { %v1444_v46 = vsub.f32 0.0, %v1236_v23  ;;  %v3288_v34 = vpop.eup %2484  ;;  %v3290_v40 = vmul.f32 0.5, %v1194_v45  ;;  %v1252_v47 = vmul.f32 0.3275911, %v1236_v23  ;;  %v3293_v53 = vmul.f32 0.70710677, %v3286_v60  ;;  %v3300_v45 = vpop.permute.xlu0 %1020 }
 0x215   : > { %v3295_v57 = vpop.eup %2486  ;;  %2498 = vpow2.f32 %v1474_v39  ;;  %v1265_v59 = vadd.f32 1.0, %v1249_v42  ;;  %v1462_v61 = vmul.f32 %v1446_v43, %v1238_v37  ;;  %v1200_v35 = vadd.f32 %v3242_v50, %v3228_v17 }
 0x216   : > { %4011 = vst [vmem:[#allocation23_spill] sm:$0xff] %v3293_v53  ;;  %2500 = vrcp.f32 %v1267_v12  ;;  %v1476_v4 = vmul.f32 1.442695, %v1457_v55  ;;  %v1460_v0 = vmul.f32 %v1444_v46, %v1236_v23  ;;  %v1239_v5 = vand.u32 2147483647, %v3293_v53  ;;  %v3306_v29 = vpop.eup %2488 }
 0x217   : > { %2502 = vpow2.f32 %v1480_v26  ;;  %v1270_v7 = vadd.f32 1.0, %v1254_v51  ;;  %v3302_v38 = vmul.f32 0.5, %v1115_v3  ;;  %v3304_v19 = vmul.f32 0.70710677, %v1200_v35 }
 0x218   : > { %v1268_v32 = vadd.f32 1.0, %v1252_v47  ;;  %v1255_v54 = vmul.f32 0.3275911, %v1239_v5  ;;  %v1447_v25 = vsub.f32 0.0, %v1239_v5  ;;  %v1121_v17 = vadd.f32 %v3244_v24, %v3300_v45 }
 0x219   : > { %4012 = vst [vmem:[#allocation24_spill] sm:$0xff] %v3302_v38  ;;  %2504 = vrcp.f32 %v1265_v59  ;;  %v1486_v50 = vmul.f32 1.442695, %v1462_v61  ;;  %v1237_v37 = vand.u32 2147483647, %v3304_v19  ;;  %v1204_v39 = vadd.f32 %v3248_v28, %v3263_v56  ;;  %v3313_v42 = vpop.eup %2490 }
 0x21a   : > { %2506 = vpow2.f32 %v1476_v4  ;;  %v1482_v3 = vmul.f32 1.442695, %v1460_v0  ;;  %v1463_v23 = vmul.f32 %v1447_v25, %v1239_v5  ;;  %v3315_v12 = vmul.f32 0.70710677, %v1121_v17  ;;  %v3317_v55 = vpop.eup %2492 }
 0x21b   : > { %2508 = vrcp.f32 %v1270_v7  ;;  %v1253_v43 = vmul.f32 0.3275911, %v1237_v37  ;;  %v1445_v26 = vsub.f32 0.0, %v1237_v37  ;;  %v3319_v24 = vmul.f32 0.70710677, %v1204_v39 }
 0x21c   : > { %2510 = vrcp.f32 %v1268_v32  ;;  %v3322_v51 = vmul.f32 0.5, %v3272_v8  ;;  %v1271_v46 = vadd.f32 1.0, %v1255_v54  ;;  %v1242_v28 = vand.u32 2147483647, %v3315_v12  ;;  %v3325_v47 = vpop.eup %2494 }
 0x21d   : > { %2512 = vpow2.f32 %v1486_v50  ;;  %v1488_v59 = vmul.f32 1.442695, %v1463_v23  ;;  %v1461_v61 = vmul.f32 %v1445_v26, %v1237_v37  ;;  %v1240_v4 = vand.u32 2147483647, %v3319_v24  ;;  %v3328_v0 = vpop.eup %2496 }
 0x21e   : > { %v1269_v5 = vadd.f32 1.0, %v1253_v43  ;;  %v1258_v7 = vmul.f32 0.3275911, %v1242_v28  ;;  %v1450_v25 = vsub.f32 0.0, %v1242_v28  ;;  %v3332_v32 = vadd.f32 %v3250_v16, %v3300_v45 }
 0x21f   : > { %v3334_v8 = vpop.eup %2498  ;;  %2514 = vpow2.f32 %v1482_v3  ;;  %v1484_v54 = vmul.f32 1.442695, %v1461_v61  ;;  %v1256_v14 = vmul.f32 0.3275911, %v1240_v4  ;;  %v1448_v30 = vsub.f32 0.0, %v1240_v4 }
 0x220   : > { %4013 = vst [vmem:[#allocation25_spill] sm:$0xff] %v3332_v32  ;;  %v3336_v50 = vpop.eup %2500  ;;  %2516 = vrcp.f32 %v1271_v46  ;;  %v3339_v37 = vmul.f32 0.5, %v3286_v60  ;;  %v1466_v23 = vmul.f32 %v1450_v25, %v1242_v28  ;;  %v3342_v43 = vmul.f32 0.70710677, %v3332_v32 }
 0x221   : > { %v3344_v26 = vpop.eup %2502  ;;  %2518 = vpow2.f32 %v1488_v59  ;;  %v1274_v16 = vadd.f32 1.0, %v1258_v7  ;;  %v1464_v41 = vmul.f32 %v1448_v30, %v1240_v4  ;;  %v3348_v3 = vadd.f32 %v3254_v52, %v3263_v56 }
 0x222   : > { %4014 = vst [vmem:[#allocation26_spill] sm:$0xff] %v3339_v37  ;;  %4015 = vst [vmem:[#allocation27_spill] sm:$0xff] %v3342_v43  ;;  %2520 = vrcp.f32 %v1269_v5  ;;  %v3350_v61 = vmul.f32 0.5, %v1200_v35  ;;  %v1272_v46 = vadd.f32 1.0, %v1256_v14  ;;  %v1243_v60 = vand.u32 2147483647, %v3342_v43 }
 0x223   : > { %4016 = vst [vmem:[#allocation28_spill] sm:$0xff] %v3348_v3  ;;  %v3353_v49 = vpop.eup %2504  ;;  %2522 = vpow2.f32 %v1484_v54  ;;  %v1494_v28 = vmul.f32 1.442695, %v1466_v23  ;;  %v3355_v25 = vmul.f32 0.5, %v1121_v17  ;;  %v3358_v59 = vmul.f32 0.70710677, %v3348_v3 }
 0x224   : > { %v3360_v30 = vpop.eup %2506  ;;  %v1490_v4 = vmul.f32 1.442695, %v1464_v41  ;;  %v1259_v52 = vmul.f32 0.3275911, %v1243_v60  ;;  %v1451_v56 = vsub.f32 0.0, %v1243_v60  ;;  %v1210_v35 = vadd.f32 %v3265_v63, %v3300_v45 }
 0x225   : > { %4017 = vst [vmem:[#allocation29_spill] sm:$0xff] %v3355_v25  ;;  %4018 = vst [vmem:[#allocation30_spill] sm:$0xff] %v3358_v59  ;;  %v3364_v14 = vpop.eup %2508  ;;  %2524 = vrcp.f32 %v1274_v16  ;;  %v3366_v5 = vmul.f32 0.5, %v1204_v39  ;;  %v1241_v7 = vand.u32 2147483647, %v3358_v59  ;;  %v3371_v17 = vadd.f32 %v3268_v44, %v3300_v45 }
 0x226   : > { %v3373_v54 = vpop.eup %2510  ;;  %2526 = vrcp.f32 %v1272_v46  ;;  %v1275_v41 = vadd.f32 1.0, %v1259_v52  ;;  %v1467_v23 = vmul.f32 %v1451_v56, %v1243_v60  ;;  %v3375_v11 = vmul.f32 0.70710677, %v1210_v35 }
 0x227   : > { %4019 = vst [vmem:[#allocation31_spill] sm:$0xff] %v3366_v5  ;;  %4020 = vst [vmem:[#allocation32_spill] sm:$0xff] %v3371_v17  ;;  %v3377_v36 = vpop.eup %2512  ;;  %2528 = vpow2.f32 %v1494_v28  ;;  %v1257_v63 = vmul.f32 0.3275911, %v1241_v7  ;;  %v1449_v16 = vsub.f32 0.0, %v1241_v7  ;;  %v3383_v45 = vmul.f32 0.5, %v1210_v35 }
 0x228   : > { %4021 = vst [vmem:[#allocation33_spill] sm:$0xff] %v3375_v11  ;;  %v3380_v39 = vmul.f32 0.70710677, %v3371_v17  ;;  %2530 = vpow2.f32 %v1490_v4  ;;  %v1496_v1 = vmul.f32 1.442695, %v1467_v23  ;;  %vm1538_vm13 = vcmp.ge.f32.partialorder %v3235_v31, 0.0 }
 0x229   : > { %v1244_v44 = vand.u32 2147483647, %v3375_v11  ;;  %4023 = vst [vmem:[#allocation35_spill] sm:$0xff] %v3383_v45  ;;  %v3385_v2 = vpop.eup %2514  ;;  %2532 = vrcp.f32 %v1275_v41  ;;  %v1273_v46 = vadd.f32 1.0, %v1257_v63  ;;  %v1465_v60 = vmul.f32 %v1449_v16, %v1241_v7 }
 0x22a   : > { %4022 = vst [vmem:[#allocation34_spill] sm:$0xff] %v3380_v39  ;;  %v1245_v52 = vand.u32 2147483647, %v3380_v39  ;;  %v3388_v56 = vpop.eup %2516  ;;  %2534 = vpow2.f32 %v1496_v1  ;;  %v1294_v33 = vmul.f32 1.0614054, %v3288_v34  ;;  %vm1536_vm14 = vcmp.ge.f32.partialorder %v3237_v22, 0.0 }
 0x22b   : > { %v1260_v28 = vmul.f32 0.3275911, %v1244_v44  ;;  %v1452_v48 = vsub.f32 0.0, %v1244_v44  ;;  %v3391_v4 = vpop.eup %2518  ;;  %2536 = vrcp.f32 %v1273_v46  ;;  %v1492_v23 = vmul.f32 1.442695, %v1465_v60 }
 0x22c   : > { %4024 = vst [vmem:[#allocation36_spill] sm:$0xff] %v3391_v4  ;;  %v1261_v35 = vmul.f32 0.3275911, %v1245_v52  ;;  %v1453_v17 = vsub.f32 0.0, %v1245_v52  ;;  %v3393_v3 = vpop.eup %2520  ;;  %v1310_v7 = vadd.f32 -1.4531521, %v1294_v33 }
 0x22d   : > { %v1276_v41 = vadd.f32 1.0, %v1260_v28  ;;  %v1468_v63 = vmul.f32 %v1452_v48, %v1244_v44  ;;  %v1298_v16 = vmul.f32 1.0614054, %v3317_v55  ;;  %v3396_v37 = vpop.eup %2522  ;;  %2538 = vpow2.f32 %v1492_v23 }
 0x22e   : > { %v1277_v1 = vadd.f32 1.0, %v1261_v35  ;;  %v1469_v39 = vmul.f32 %v1453_v17, %v1245_v52  ;;  %v1296_v32 = vmul.f32 1.0614054, %v3325_v47  ;;  %v1326_v46 = vmul.f32 %v3288_v34, %v1310_v7 }
 0x22f   : > { %2540 = vrcp.f32 %v1276_v41  ;;  %v1498_v45 = vmul.f32 1.442695, %v1468_v63  ;;  %v1314_v60 = vadd.f32 -1.4531521, %v1298_v16  ;;  %v3400_v5 = vpop.eup %2524  ;;  %v1300_v33 = vmul.f32 1.0614054, %v3373_v54 }
 0x230   : > { %2542 = vrcp.f32 %v1277_v1  ;;  %v1500_v28 = vmul.f32 1.442695, %v1469_v39  ;;  %v1312_v48 = vadd.f32 -1.4531521, %v1296_v32  ;;  %v3403_v44 = vpop.eup %2526  ;;  %v1342_v23 = vadd.f32 1.4214138, %v1326_v46 }
 0x231   : > { %2544 = vpow2.f32 %v1498_v45  ;;  %v1330_v17 = vmul.f32 %v3317_v55, %v1314_v60  ;;  %v1295_v52 = vmul.f32 1.0614054, %v3295_v57  ;;  %v3407_v35 = vpop.eup %2528  ;;  %v1316_v63 = vadd.f32 -1.4531521, %v1300_v33 }
 0x232   : > { %4025 = vst [vmem:[#allocation37_spill] sm:$0xff] %v3407_v35  ;;  %2546 = vpow2.f32 %v1500_v28  ;;  %v1328_v41 = vmul.f32 %v3325_v47, %v1312_v48  ;;  %v1299_v7 = vmul.f32 1.0614054, %v3336_v50  ;;  %v3411_v39 = vpop.eup %2530  ;;  %v1358_v32 = vmul.f32 %v3288_v34, %v1342_v23 }
 0x233   : > { %4026 = vst [vmem:[#allocation38_spill] sm:$0xff] %v3411_v39  ;;  %v1346_v16 = vadd.f32 1.4214138, %v1330_v17  ;;  %v1311_v1 = vadd.f32 -1.4531521, %v1295_v52  ;;  %v3415_v46 = vpop.eup %2532  ;;  %v1332_v25 = vmul.f32 %v3373_v54, %v1316_v63  ;;  %vm1540_vm15 = vcmp.ge.f32.partialorder %v3279_v21, 0.0 }
 0x234   : > { %v1297_v45 = vmul.f32 1.0614054, %v3353_v49  ;;  %v1344_v60 = vadd.f32 1.4214138, %v1328_v41  ;;  %v1315_v38 = vadd.f32 -1.4531521, %v1299_v7  ;;  %v3419_v48 = vpop.eup %2534 }
 0x235   : > { %v1301_v28 = vmul.f32 1.0614054, %v3393_v3  ;;  %4027 = vst [vmem:[#allocation39_spill] sm:$0xff] %v3419_v48  ;;  %v1374_v33 = vadd.f32 -0.28449672, %v1358_v32  ;;  %v1362_v59 = vmul.f32 %v3317_v55, %v1346_v16  ;;  %v1327_v4 = vmul.f32 %v3295_v57, %v1311_v1  ;;  %v3423_v17 = vpop.eup %2536 }
 0x236   : > { %v1313_v23 = vadd.f32 -1.4531521, %v1297_v45  ;;  %v1360_v52 = vmul.f32 %v3325_v47, %v1344_v60  ;;  %v1348_v43 = vadd.f32 1.4214138, %v1332_v25  ;;  %v1331_v41 = vmul.f32 %v3336_v50, %v1315_v38 }
 0x237   : > { %v1317_v39 = vadd.f32 -1.4531521, %v1301_v28  ;;  %v1390_v63 = vmul.f32 %v3288_v34, %v1374_v33  ;;  %v1378_v7 = vadd.f32 -0.28449672, %v1362_v59  ;;  %v1343_v53 = vadd.f32 1.4214138, %v1327_v4  ;;  %v3429_v32 = vpop.eup %2538 }
 0x238   : > { %v1329_v48 = vmul.f32 %v3353_v49, %v1313_v23  ;;  %4028 = vst [vmem:[#allocation40_spill] sm:$0xff] %v3429_v32  ;;  %v1376_v16 = vadd.f32 -0.28449672, %v1360_v52  ;;  %v1364_v1 = vmul.f32 %v3373_v54, %v1348_v43  ;;  %v1347_v45 = vadd.f32 1.4214138, %v1331_v41 }
 0x239   : > { %v1333_v35 = vmul.f32 %v3393_v3, %v1317_v39  ;;  %v3433_v11 = vpop.eup %2540  ;;  %v1406_v25 = vadd.f32 0.2548296, %v1390_v63  ;;  %v1394_v38 = vmul.f32 %v3317_v55, %v1378_v7  ;;  %v1359_v60 = vmul.f32 %v3295_v57, %v1343_v53 }
 0x23a   : > { %v1345_v28 = vadd.f32 1.4214138, %v1329_v48  ;;  %v3437_v59 = vpop.eup %2542  ;;  %v1392_v4 = vmul.f32 %v3325_v47, %v1376_v16  ;;  %v1380_v33 = vadd.f32 -0.28449672, %v1364_v1  ;;  %v1363_v43 = vmul.f32 %v3336_v50, %v1347_v45 }
 0x23b   : > { %v1349_v23 = vadd.f32 1.4214138, %v1333_v35  ;;  %v3442_v52 = vpop.eup %2544  ;;  %v1422_v39 = vmul.f32 %v3288_v34, %v1406_v25  ;;  %v1410_v41 = vadd.f32 0.2548296, %v1394_v38  ;;  %v1375_v63 = vadd.f32 -0.28449672, %v1359_v60 }
 0x23c   : > { %v1361_v7 = vmul.f32 %v3353_v49, %v1345_v28  ;;  %v3446_v53 = vpop.eup %2546  ;;  %v1408_v48 = vadd.f32 0.2548296, %v1392_v4  ;;  %v1396_v32 = vmul.f32 %v3373_v54, %v1380_v33  ;;  %v1379_v16 = vadd.f32 -0.28449672, %v1363_v43 }
 0x23d   : > { %4029 = vst [vmem:[#allocation41_spill] sm:$0xff] %v3446_v53  ;;  %v1365_v1 = vmul.f32 %v3393_v3, %v1349_v23  ;;  %v1502_v35 = vmul.f32 %v3306_v29, %v1422_v39  ;;  %v1426_v34 = vmul.f32 %v3317_v55, %v1410_v41  ;;  %v1391_v45 = vmul.f32 %v3295_v57, %v1375_v63 }
 0x23e   : > { %v1377_v25 = vadd.f32 -0.28449672, %v1361_v7  ;;  %v1424_v38 = vmul.f32 %v3325_v47, %v1408_v48  ;;  %v1412_v60 = vadd.f32 0.2548296, %v1396_v32  ;;  %v1395_v28 = vmul.f32 %v3336_v50, %v1379_v16 }
 0x23f   : > { %v1381_v4 = vadd.f32 -0.28449672, %v1365_v1  ;;  %v1518_v33 = vsub.f32 1.0, %v1502_v35  ;;  %v1506_v43 = vmul.f32 %v3328_v0, %v1426_v34  ;;  %v1407_v23 = vadd.f32 0.2548296, %v1391_v45 }
 0x240   : > { %v1393_v53 = vmul.f32 %v3353_v49, %v1377_v25  ;;  %v1504_v29 = vmul.f32 %v3334_v8, %v1424_v38  ;;  %v1428_v55 = vmul.f32 %v3373_v54, %v1412_v60  ;;  %v1411_v39 = vadd.f32 0.2548296, %v1395_v28 }
 0x241   : > { %v1397_v47 = vmul.f32 %v3393_v3, %v1381_v4  ;;  %v1550_v32 = vsub.f32 0.0, %v1518_v33  ;;  %v1522_v41 = vsub.f32 1.0, %v1506_v43  ;;  %v1423_v63 = vmul.f32 %v3295_v57, %v1407_v23 }
 0x242   : > { %v1409_v7 = vadd.f32 0.2548296, %v1393_v53  ;;  %vm1539_vm1 = vcmp.ge.f32.partialorder %v3246_v18, 0.0  ;;  %v1520_v0 = vsub.f32 1.0, %v1504_v29  ;;  %v1508_v48 = vmul.f32 %v3385_v2, %v1428_v55 }
 0x243   : > { %v1427_v16 = vmul.f32 %v3336_v50, %v1411_v39  ;;  %v1413_v1 = vadd.f32 0.2548296, %v1397_v47  ;;  %vm1537_vm2 = vcmp.ge.f32.partialorder %v3261_v62, 0.0  ;;  %v1566_v8 = vsel %vm1534_vm12, %v1518_v33, %v1550_v32 }
 0x244   : > { %v1554_v54 = vsub.f32 0.0, %v1522_v41  ;;  %v1503_v35 = vmul.f32 %v3313_v42, %v1423_v63  ;;  %v1425_v34 = vmul.f32 %v3353_v49, %v1409_v7  ;;  %v1598_v57 = vadd.f32 1.0, %v1566_v8 }
 0x245   : > { %v1552_v53 = vsub.f32 0.0, %v1520_v0  ;;  %v1524_v45 = vsub.f32 1.0, %v1508_v48  ;;  %v1507_v25 = vmul.f32 %v3344_v26, %v1427_v16  ;;  %vm1541_vm3 = vcmp.ge.f32.partialorder %v3304_v19, 0.0 }
 0x246   : > { %v1570_v2 = vsel %vm1538_vm13, %v1522_v41, %v1554_v54  ;;  %v1519_v50 = vsub.f32 1.0, %v1503_v35  ;;  %v1505_v38 = vmul.f32 %v3360_v30, %v1425_v34  ;;  %v1429_v15 = vmul.f32 %v3393_v3, %v1413_v1 }
 0x247   : > { %v3480_v60 = vmul.f32 %v1598_v57, %v3252_v27  ;;  %v1602_v42 = vadd.f32 1.0, %v1570_v2  ;;  %v1568_v49 = vsel %vm1536_vm14, %v1520_v0, %v1552_v53  ;;  %v1556_v28 = vsub.f32 0.0, %v1524_v45 }
 0x248   : > { %v1600_v4 = vadd.f32 1.0, %v1568_v49  ;;  %v1551_v26 = vsub.f32 0.0, %v1519_v50  ;;  %v1523_v33 = vsub.f32 1.0, %v1507_v25  ;;  %v1521_v43 = vsub.f32 1.0, %v1505_v38 }
 0x249   : > { %1634 = vrot.lane.b32.xlu1 %v3480_v60, %s2680_s18  ;;  %v3487_v31 = vmul.f32 %v1602_v42, %v3259_v58  ;;  %v1572_v3 = vsel %vm1540_vm15, %v1524_v45, %v1556_v28  ;;  %v1509_v27 = vmul.f32 %v3396_v37, %v1429_v15  ;;  %v1302_v30 = vmul.f32 1.0614054, %v3364_v14 }
 0x24a   : > { %v3494_v22 = vmul.f32 %v1600_v4, %v3274_v10  ;;  %v1604_v23 = vadd.f32 1.0, %v1572_v3  ;;  %v1567_v29 = vsel %vm1535_vm0, %v1519_v50, %v1551_v26  ;;  %v1555_v55 = vsub.f32 0.0, %v1523_v33 }
 0x24b   : > { %1636 = vrot.lane.b32.xlu0 %v3487_v31, %s2680_s18  ;;  %v1599_v58 = vadd.f32 1.0, %v1567_v29  ;;  %v1553_v39 = vsub.f32 0.0, %v1521_v43  ;;  %v1525_v47 = vsub.f32 1.0, %v1509_v27  ;;  %v1318_v21 = vadd.f32 -1.4531521, %v1302_v30 }
 0x24c   : > { %v3501_v32 = vmul.f32 %v1604_v23, %v3322_v51  ;;  %v1571_v37 = vsel %vm1539_vm1, %v1523_v33, %v1555_v55  ;;  %v1306_v10 = vmul.f32 1.0614054, %v3400_v5  ;;  %v1304_v41 = vmul.f32 1.0614054, %v3403_v44 }
 0x24d   : > { %1650 = vrot.lane.b32.xlu1 %v3494_v22, %s2680_s18  ;;  %v3510_v6 = vmul.f32 %v1599_v58, %v3256_v13  ;;  %v1603_v63 = vadd.f32 1.0, %v1571_v37  ;;  %v1569_v7 = vsel %vm1537_vm2, %v1521_v43, %v1553_v39  ;;  %v1557_v0 = vsub.f32 0.0, %v1525_v47 }
 0x24e   : > { %v1601_v51 = vadd.f32 1.0, %v1569_v7  ;;  %v1334_v48 = vmul.f32 %v3364_v14, %v1318_v21  ;;  %v1322_v18 = vadd.f32 -1.4531521, %v1306_v10  ;;  %v1320_v16 = vadd.f32 -1.4531521, %v1304_v41 }
 0x24f   : > { %1652 = vrot.lane.b32.xlu0 %v3501_v32, %s2680_s18  ;;  %v3518_v1 = vmul.f32 %v1603_v63, %v3281_v20  ;;  %v1573_v13 = vsel %vm1541_vm3, %v1525_v47, %v1557_v0  ;;  %v1308_v8 = vmul.f32 1.0614054, %v3433_v11  ;;  %v1303_v62 = vmul.f32 1.0614054, %v3388_v56 }
 0x250   : > { %v3525_v54 = vmul.f32 %v1601_v51, %v3290_v40  ;;  %v1605_v35 = vadd.f32 1.0, %v1573_v13  ;;  %v1350_v34 = vadd.f32 1.4214138, %v1334_v48  ;;  %v1338_v57 = vmul.f32 %v3400_v5, %v1322_v18 }
 0x251   : > { %1730 = vrot.lane.b32.xlu1 %v3480_v60, %s2682_s12  ;;  %v1336_v20 = vmul.f32 %v3403_v44, %v1320_v16  ;;  %v1324_v53 = vadd.f32 -1.4531521, %v1308_v8  ;;  %v1319_v45 = vadd.f32 -1.4531521, %v1303_v62  ;;  %v1307_v19 = vmul.f32 1.0614054, %v3415_v46 }
 0x252   : > { %v3533_v25 = vmul.f32 %v1605_v35, %v3350_v61  ;;  %v1366_v2 = vmul.f32 %v3364_v14, %v1350_v34  ;;  %v1354_v40 = vadd.f32 1.4214138, %v1338_v57  ;;  %v1305_v50 = vmul.f32 1.0614054, %v3423_v17 }
 0x253   : > { %1732 = vrot.lane.b32.xlu0 %v3487_v31, %s2682_s12  ;;  %v1352_v38 = vadd.f32 1.4214138, %v1336_v20  ;;  %v1340_v15 = vmul.f32 %v3433_v11, %v1324_v53  ;;  %v1335_v42 = vmul.f32 %v3388_v56, %v1319_v45  ;;  %v1323_v49 = vadd.f32 -1.4531521, %v1307_v19 }
 0x254   : > { %v1382_v28 = vadd.f32 -0.28449672, %v1366_v2  ;;  %v1370_v4 = vmul.f32 %v3400_v5, %v1354_v40  ;;  %v1321_v26 = vadd.f32 -1.4531521, %v1305_v50  ;;  %v1309_v61 = vmul.f32 1.0614054, %v3437_v59 }
 0x255   : > { %1746 = vrot.lane.b32.xlu1 %v3494_v22, %s2682_s12  ;;  %v1368_v33 = vmul.f32 %v3403_v44, %v1352_v38  ;;  %v1356_v43 = vadd.f32 1.4214138, %v1340_v15  ;;  %v1351_v3 = vadd.f32 1.4214138, %v1335_v42  ;;  %v1339_v27 = vmul.f32 %v3415_v46, %v1323_v49  ;;  %v4030_v38 = vld [vmem:[#allocation33_spill] sm:$0xff] }
 0x256   : > { %v1398_v30 = vmul.f32 %v3364_v14, %v1382_v28  ;;  %v1386_v23 = vadd.f32 -0.28449672, %v1370_v4  ;;  %v1337_v29 = vmul.f32 %v3423_v17, %v1321_v26  ;;  %v1325_v55 = vadd.f32 -1.4531521, %v1309_v61  ;;  %v4031_v42 = vld [vmem:[#allocation37_spill] sm:$0xff]  ;;  %v4032_v28 = vld [vmem:[#allocation23_spill] sm:$0xff] }
 0x257   : > { %1748 = vrot.lane.b32.xlu0 %v3501_v32, %s2682_s12  ;;  %v1384_v58 = vadd.f32 -0.28449672, %v1368_v33  ;;  %v1372_v39 = vmul.f32 %v3433_v11, %v1356_v43  ;;  %v1367_v47 = vmul.f32 %v3388_v56, %v1351_v3  ;;  %v1355_v21 = vadd.f32 1.4214138, %v1339_v27  ;;  %v4033_v4 = vld [vmem:[#allocation38_spill] sm:$0xff] }
 0x258   : > { %v1414_v37 = vadd.f32 0.2548296, %v1398_v30  ;;  %v1402_v10 = vmul.f32 %v3400_v5, %v1386_v23  ;;  %v1353_v41 = vadd.f32 1.4214138, %v1337_v29  ;;  %v1341_v63 = vmul.f32 %v3437_v59, %v1325_v55  ;;  %v4034_v23 = vld [vmem:[#allocation27_spill] sm:$0xff] }
 0x259   : > { %vm1542_vm4 = vcmp.ge.f32.partialorder %v3276_v9, 0.0  ;;  %1642 = vrot.lane.b32.xlu1 %v3510_v6, %s2680_s18  ;;  %v1400_v7 = vmul.f32 %v3403_v44, %v1384_v58  ;;  %v1388_v0 = vadd.f32 -0.28449672, %v1372_v39  ;;  %v1383_v51 = vadd.f32 -0.28449672, %v1367_v47  ;;  %v4035_v58 = vld [vmem:[#allocation36_spill] sm:$0xff] }
 0x25a   : > { %v1371_v48 = vmul.f32 %v3415_v46, %v1355_v21  ;;  %v1430_v18 = vmul.f32 %v3364_v14, %v1414_v37  ;;  %v1418_v16 = vadd.f32 0.2548296, %v1402_v10  ;;  %v1369_v13 = vmul.f32 %v3423_v17, %v1353_v41  ;;  %v4036_v47 = vld [vmem:[#allocation30_spill] sm:$0xff] }
 0x25b   : > { %v1357_v8 = vadd.f32 1.4214138, %v1341_v63  ;;  %vm1546_vm5 = vcmp.ge.f32.partialorder %v3315_v12, 0.0  ;;  %1644 = vrot.lane.b32.xlu0 %v3518_v1, %s2680_s18  ;;  %v1416_v62 = vadd.f32 0.2548296, %v1400_v7  ;;  %v1404_v35 = vmul.f32 %v3433_v11, %v1388_v0 }
 0x25c   : > { %v1399_v34 = vmul.f32 %v3388_v56, %v1383_v51  ;;  %v1387_v57 = vadd.f32 -0.28449672, %v1371_v48  ;;  %vm1544_vm6 = vcmp.ge.f32.partialorder %v3319_v24, 0.0  ;;  %v1510_v20 = vmul.f32 %v3377_v36, %v1430_v18  ;;  %v4038_v48 = vld [vmem:[#allocation40_spill] sm:$0xff] }
 0x25d   : > { %v1434_v14 = vmul.f32 %v3400_v5, %v1418_v16  ;;  %v1385_v53 = vadd.f32 -0.28449672, %v1369_v13  ;;  %v1373_v45 = vmul.f32 %v3437_v59, %v1357_v8  ;;  %1658 = vrot.lane.b32.xlu1 %v3525_v54, %s2680_s18  ;;  %v1432_v19 = vmul.f32 %v3403_v44, %v1416_v62 }
 0x25e   : > { %v1420_v2 = vadd.f32 0.2548296, %v1404_v35  ;;  %v1415_v40 = vadd.f32 0.2548296, %v1399_v34  ;;  %v1403_v50 = vmul.f32 %v3415_v46, %v1387_v57  ;;  %vm1548_vm7 = vcmp.ge.f32.partialorder %v4030_v38, 0.0 }
 0x25f   : > { %v1526_v15 = vsub.f32 1.0, %v1510_v20  ;;  %v1514_v49 = vmul.f32 %v4031_v42, %v1434_v14  ;;  %v1401_v36 = vmul.f32 %v3423_v17, %v1385_v53  ;;  %v1389_v5 = vadd.f32 -0.28449672, %v1373_v45  ;;  %1660 = vrot.lane.b32.xlu0 %v3533_v25, %s2680_s18  ;;  %v4040_v20 = vld [vmem:[#allocation29_spill] sm:$0xff] }
 0x260   : > { %vm1543_vm8 = vcmp.ge.f32.partialorder %v4032_v28, 0.0  ;;  %v1512_v26 = vmul.f32 %v4033_v4, %v1432_v19  ;;  %v1436_v44 = vmul.f32 %v3433_v11, %v1420_v2  ;;  %v1431_v61 = vmul.f32 %v3388_v56, %v1415_v40  ;;  %v4041_v53 = vld [vmem:[#allocation41_spill] sm:$0xff]  ;;  %v4042_v19 = vld [vmem:[#allocation31_spill] sm:$0xff] }
 0x261   : > { %v1419_v33 = vadd.f32 0.2548296, %v1403_v50  ;;  %v1558_v43 = vsub.f32 0.0, %v1526_v15  ;;  %v1530_v3 = vsub.f32 1.0, %v1514_v49  ;;  %v1417_v27 = vadd.f32 0.2548296, %v1401_v36  ;;  %1738 = vrot.lane.b32.xlu1 %v3510_v6, %s2682_s12 }
 0x262   : > { %v1405_v30 = vmul.f32 %v3437_v59, %v1389_v5  ;;  %vm1547_vm11 = vcmp.ge.f32.partialorder %v4034_v23, 0.0  ;;  %v1528_v29 = vsub.f32 1.0, %v1512_v26  ;;  %v1516_v55 = vmul.f32 %v3442_v52, %v1436_v44  ;;  %v4043_v5 = vld [vmem:[#allocation35_spill] sm:$0xff] }
 0x263   : > { %v1511_v39 = vmul.f32 %v4035_v58, %v1431_v61  ;;  %v1435_v11 = vmul.f32 %v3415_v46, %v1419_v33  ;;  %vm1545_vm12 = vcmp.ge.f32.partialorder %v4036_v47, 0.0  ;;  %v1574_v56 = vsel %vm1542_vm4, %v1526_v15, %v1558_v43  ;;  %1740 = vrot.lane.b32.xlu0 %v3518_v1, %s2682_s12  ;;  %v4037_v46 = vld [vmem:[#allocation39_spill] sm:$0xff]  ;;  %v4044_v61 = vld [vmem:[#allocation25_spill] sm:$0xff]  ;;  %v4046_v58 = vld [vmem:[#allocation26_spill] sm:$0xff] }
 0x264   : > { %v1562_v21 = vsub.f32 0.0, %v1530_v3  ;;  %v1433_v37 = vmul.f32 %v3423_v17, %v1417_v27  ;;  %v1421_v10 = vadd.f32 0.2548296, %v1405_v30  ;;  %v1606_v41 = vadd.f32 1.0, %v1574_v56  ;;  %v4039_v17 = vld [vmem:[#allocation24_spill] sm:$0xff]  ;;  %v4045_v30 = vld [vmem:[#allocation34_spill] sm:$0xff] }
 0x265   : > { %v1560_v63 = vsub.f32 0.0, %v1528_v29  ;;  %v1532_v7 = vsub.f32 1.0, %v1516_v55  ;;  %v1527_v52 = vsub.f32 1.0, %v1511_v39  ;;  %v1515_v51 = vmul.f32 %v4037_v46, %v1435_v11  ;;  %1754 = vrot.lane.b32.xlu1 %v3525_v54, %s2682_s12  ;;  %v4047_v56 = vld [vmem:[#allocation28_spill] sm:$0xff] }
 0x266   : > { %v1578_v0 = vsel %vm1546_vm5, %v1530_v3, %v1562_v21  ;;  %v1513_v18 = vmul.f32 %v4038_v48, %v1433_v37  ;;  %v1437_v9 = vmul.f32 %v3437_v59, %v1421_v10  ;;  %v3605_v16 = vmul.f32 %v1606_v41, %v4039_v17  ;;  %v4048_v37 = vld [vmem:[#allocation32_spill] sm:$0xff]  ;;  %v384_v48 = vld [vmem:[%s3953_s7 + $0x10] sm:$0xff]  ;;  %v1859_v17 = vld [vmem:[%s3951_s5 + $0x8] sm:$0xff] }
 0x267   : > { %v1610_v13 = vadd.f32 1.0, %v1578_v0  ;;  %v1576_v8 = vsel %vm1544_vm6, %v1528_v29, %v1560_v63  ;;  %v1564_v62 = vsub.f32 0.0, %v1532_v7  ;;  %v1559_v12 = vsub.f32 0.0, %v1527_v52  ;;  %1756 = vrot.lane.b32.xlu0 %v3533_v25, %s2682_s12  ;;  %v382_v46 = vld [vmem:[%s3953_s7] sm:$0xff] }
 0x268   : > { %v1608_v35 = vadd.f32 1.0, %v1576_v8  ;;  %v1531_v34 = vsub.f32 1.0, %v1515_v51  ;;  %v1529_v57 = vsub.f32 1.0, %v1513_v18  ;;  %v1517_v45 = vmul.f32 %v4041_v53, %v1437_v9  ;;  %v383_v51 = vld [vmem:[%s3953_s7 + $0x8] sm:$0xff]  ;;  %v385_v18 = vld [vmem:[%s3953_s7 + $0x18] sm:$0xff]  ;;  %v1858_v9 = vld [vmem:[%s3951_s5] sm:$0xff] }
 0x269   : > { %v3612_v59 = vmul.f32 %v1610_v13, %v4040_v20  ;;  %v1580_v14 = vsel %vm1548_vm7, %v1532_v7, %v1564_v62  ;;  %v2293_v24 = vpack.c.bf16 %v3518_v1, %v3510_v6  ;;  %v1575_v50 = vsel %vm1543_vm8, %v1527_v52, %v1559_v12  ;;  %1638 = vrot.lane.b32.xlu1 %v3605_v16, %s2680_s18  ;;  %v1860_v13 = vld [vmem:[%s3951_s5 + $0x10] sm:$0xff]  ;;  %v1861_v8 = vld [vmem:[%s3951_s5 + $0x18] sm:$0xff]  ;;  %v4054_v6 = vld [vmem:[#allocation20_spill] sm:$0xff] }
 0x26a   : > { %v3620_v2 = vmul.f32 %v1608_v35, %v4042_v19  ;;  %v1612_v40 = vadd.f32 1.0, %v1580_v14  ;;  %v1563_v15 = vsub.f32 0.0, %v1531_v34  ;;  %v1607_v42 = vadd.f32 1.0, %v1575_v50  ;;  %v1630_v19 = vld [vmem:[%s3950_s4] sm:$0xff] }
 0x26b   : > { %v1561_v49 = vsub.f32 0.0, %v1529_v57  ;;  %v1533_v38 = vsub.f32 1.0, %v1517_v45  ;;  %v2317_v36 = vpack.c.bf16 %v3533_v25, %v3525_v54  ;;  %v2295_v28 = vpack.c.bf16 %v3487_v31, %v3480_v60  ;;  %1640 = vrot.lane.b32.xlu0 %v3612_v59, %s2680_s18  ;;  %v4055_v54 = vld [vmem:[#allocation22_spill] sm:$0xff] }
 0x26c   : > { %v3629_v4 = vmul.f32 %v1612_v40, %v4043_v5  ;;  %v1579_v26 = vsel %vm1547_vm11, %v1531_v34, %v1563_v15  ;;  %v2319_v44 = vpack.c.bf16 %v3501_v32, %v3494_v22  ;;  %v1595_v33 = vmul.f32 0.5, %v4044_v61 }
 0x26d   : > { %v1611_v43 = vadd.f32 1.0, %v1579_v26  ;;  %v1577_v3 = vsel %vm1545_vm12, %v1529_v57, %v1561_v49  ;;  %v1565_v27 = vsub.f32 0.0, %v1533_v38  ;;  %vm1549_vm13 = vcmp.ge.f32.partialorder %v4045_v30, 0.0  ;;  %1654 = vrot.lane.b32.xlu1 %v3620_v2, %s2680_s18  ;;  %v4051_v30 = vld [vmem:[#allocation18_spill] sm:$0xff] }
 0x26e   : > { %v1609_v23 = vadd.f32 1.0, %v1577_v3  ;;  %v2299_v29 = vpack.c.bf16 %v3612_v59, %v3605_v16  ;;  %v2323_v55 = vpack.c.bf16 %v3629_v4, %v3620_v2  ;;  %v3650_v39 = vmul.f32 %v1607_v42, %v4046_v58  ;;  %v4050_v42 = vld [vmem:[#allocation15_spill] sm:$0xff] }
 0x26f   : > { %v3652_v11 = vmul.f32 %v1611_v43, %v1595_v33  ;;  %v1581_v47 = vsel %vm1549_vm13, %v1533_v38, %v1565_v27  ;;  %v1593_v21 = vmul.f32 0.5, %v4047_v56  ;;  %v1597_v10 = vmul.f32 0.5, %v4048_v37  ;;  %1656 = vrot.lane.b32.xlu0 %v3629_v4, %s2680_s18  ;;  %v4052_v56 = vld [vmem:[#allocation16_spill] sm:$0xff]  ;;  %v4053_v37 = vld [vmem:[#allocation17_spill] sm:$0xff] }
 0x270   : > { %v1613_v41 = vadd.f32 1.0, %v1581_v47 }
 0x271   : > { %v2297_v63 = vpack.c.bf16 %v3652_v11, %v3650_v39  ;;  %v3660_v7 = vmul.f32 %v1609_v23, %v1593_v21  ;;  %1646 = vrot.lane.b32.xlu1 %v3650_v39, %s2680_s18 }
 0x272   : > { %v3662_v52 = vmul.f32 %v1613_v41, %v1597_v10 }
 0x273   : > { %1648 = vrot.lane.b32.xlu0 %v3652_v11, %s2680_s18 }
 0x274   : > { %v2321_v0 = vpack.c.bf16 %v3662_v52, %v3660_v7 }
 0x275   : > { %1662 = vrot.lane.b32.xlu1 %v3660_v7, %s2680_s18 }
 0x277   : > { %1664 = vrot.lane.b32.xlu0 %v3662_v52, %s2680_s18  ;;  %s2252_s18 = sshll.u32 %s2754_s9, 9 }
 0x278   : > { %s3896_s9 = scalar_lea.hbm %s3954_s8, %s2252_s18 }
 0x279   : > { %1734 = vrot.lane.b32.xlu1 %v3605_v16, %s2682_s12 }
 0x27b   : > { %1736 = vrot.lane.b32.xlu0 %v3612_v59, %s2682_s12 }
 0x27d   : > { %1742 = vrot.lane.b32.xlu1 %v3650_v39, %s2682_s12  ;;  %v4057_v39 = vld [vmem:[#allocation21_spill] sm:$0xff] }
 0x27f   : > { %1752 = vrot.lane.b32.xlu0 %v3629_v4, %s2682_s12 }
 0x281   : > { %1750 = vrot.lane.b32.xlu1 %v3620_v2, %s2682_s12 }
 0x283   : > { %1744 = vrot.lane.b32.xlu0 %v3652_v11, %s2682_s12 }
 0x285   : > { %1758 = vrot.lane.b32.xlu1 %v3660_v7, %s2682_s12 }
 0x287   : > { %1760 = vrot.lane.b32.xlu0 %v3662_v52, %s2682_s12 }
 0x289   : > { %388 = vperm.xlu1 %2451, %v382_v46  }
 0x28b   : > { %393 = vperm.xlu0 %2450, %v383_v51  }
 0x28d   : > { %398 = vperm.xlu1 %2451, %v384_v48  }
 0x28f   : > { %403 = vperm.xlu0 %2450, %v385_v18  }
 0x291   : > { %1864 = vperm.xlu1 %2451, %v1858_v9  }
 0x293   : > { %1869 = vperm.xlu0 %2450, %v1859_v17  }
 0x295   : > { %1874 = vperm.xlu1 %2451, %v1860_v13  }
 0x297   : > { %1879 = vperm.xlu0 %2450, %v1861_v8  }
 0x2bb   : > { %v1635_v62 = vpop.permute.xlu1 %1634 }
 0x2bd   : > { %v1637_v35 = vpop.permute.xlu0 %1636 }
 0x2bf   : > { %v1651_v12 = vpop.permute.xlu1 %1650 }
 0x2c1   : > { %v1653_v34 = vpop.permute.xlu0 %1652 }
 0x2c3   : > { %v3714_v57 = vpop.permute.xlu1 %1730 }
 0x2c5   : > { %v3716_v20 = vpop.permute.xlu0 %1732 }
 0x2c7   : > { %v3718_v14 = vpop.permute.xlu1 %1746 }
 0x2c9   : > { %v3720_v53 = vpop.permute.xlu0 %1748 }
 0x2cb   : > { %v1643_v45 = vpop.permute.xlu1 %1642 }
 0x2cc   : > { %v1674_v40 = vsel %vm827_vm9, %v1635_v62, %v1643_v45  ;;  %v1670_v43 = vsel %vm827_vm9, %v1643_v45, %v1651_v12 }
 0x2cd   : > { %v1645_v50 = vpop.permute.xlu0 %1644  ;;  %v1683_v49 = vmul.f32 %v1674_v40, %v4050_v42  ;;  %v1684_v48 = vmul.f32 %v1670_v43, %v4051_v30 }
 0x2ce   : > { %v1675_v15 = vsel %vm827_vm9, %v1637_v35, %v1645_v50  ;;  %v1671_v38 = vsel %vm827_vm9, %v1645_v50, %v1653_v34 }
 0x2cf   : > { %v1687_v5 = vmul.f32 %v1675_v15, %v4050_v42  ;;  %v1659_v26 = vpop.permute.xlu1 %1658  ;;  %v1688_v23 = vmul.f32 %v1671_v38, %v4051_v30 }
 0x2d0   : > { %v1666_v61 = vsel %vm827_vm9, %v1651_v12, %v1659_v26  ;;  %v1678_v33 = vsel %vm827_vm9, %v1659_v26, %v1635_v62 }
 0x2d1   : > { %v1661_v3 = vpop.permute.xlu0 %1660  ;;  %v2285_v27 = vpack.c.bf16 %v1687_v5, %v1683_v49  ;;  %v1682_v21 = vmul.f32 %v1678_v33, %v4052_v56  ;;  %v1685_v10 = vmul.f32 %v1666_v61, %v4053_v37  ;;  %v2311_v13 = vpack.c.bf16 %v1688_v23, %v1684_v48 }
 0x2d2   : > { %v1667_v58 = vsel %vm827_vm9, %v1653_v34, %v1661_v3  ;;  %v1679_v47 = vsel %vm827_vm9, %v1661_v3, %v1637_v35 }
 0x2d3   : > { %v1686_v41 = vmul.f32 %v1679_v47, %v4052_v56  ;;  %v1689_v46 = vmul.f32 %v1667_v58, %v4053_v37  ;;  %v1739_v51 = vpop.permute.xlu1 %1738  ;;  %2286 = vmatprep.subr.bf16.mxu0 %v2285_v27 }
 0x2d5   : > { %v2287_v18 = vpack.c.bf16 %v1686_v41, %v1682_v21  ;;  %v1741_v9 = vpop.permute.xlu0 %1740  ;;  %v2309_v17 = vpack.c.bf16 %v1689_v46, %v1685_v10 }
 0x2d7   : > { %v1755_v8 = vpop.permute.xlu1 %1754  ;;  %2288 = vmatpush1.bf16.msra.mxu0 %v2287_v18  ;;  %2310 = vmatprep.subr.bf16.mxu1 %v2309_v17 }
 0x2d8   : > { %2312 = vmatpush1.bf16.msra.mxu1 %v2311_v13  ;;  %v1762_v60 = vsel %vm914_vm10, %v3718_v14, %v1755_v8 }
 0x2d9   : > { %v1757_v62 = vpop.permute.xlu0 %1756  ;;  %v1780_v52 = vmul.f32 %v1762_v60, %v4057_v39 }
 0x2db   : > { %v1639_v35 = vpop.permute.xlu1 %1638 }
 0x2dd   : > { %v1641_v12 = vpop.permute.xlu0 %1640 }
 0x2df   : > { %v1655_v34 = vpop.permute.xlu1 %1654 }
 0x2e1   : > { %v1657_v45 = vpop.permute.xlu0 %1656 }
 0x2e3   : > { %v1647_v40 = vpop.permute.xlu1 %1646 }
 0x2e4   : > { %v1676_v50 = vsel %vm827_vm9, %v1639_v35, %v1647_v40  ;;  %v1672_v3 = vsel %vm827_vm9, %v1647_v40, %v1655_v34  ;;  %v1770_v40 = vsel %vm914_vm10, %v3714_v57, %v1739_v51 }
 0x2e5   : > { %v1649_v15 = vpop.permute.xlu0 %1648  ;;  %v1691_v38 = vmul.f32 %v1676_v50, %v4050_v42  ;;  %v1692_v18 = vmul.f32 %v1672_v3, %v4051_v30  ;;  %v1771_v50 = vsel %vm914_vm10, %v3716_v20, %v1741_v9 }
 0x2e6   : > { %v1677_v49 = vsel %vm827_vm9, %v1641_v12, %v1649_v15  ;;  %v1673_v5 = vsel %vm827_vm9, %v1649_v15, %v1657_v45  ;;  %v1763_v15 = vsel %vm914_vm10, %v3720_v53, %v1757_v62 }
 0x2e7   : > { %v1695_v26 = vmul.f32 %v1677_v49, %v4050_v42  ;;  %v1663_v61 = vpop.permute.xlu1 %1662  ;;  %v1696_v58 = vmul.f32 %v1673_v5, %v4051_v30  ;;  %v1766_v30 = vsel %vm914_vm10, %v1739_v51, %v3718_v14  ;;  %v1784_v11 = vmul.f32 %v1763_v15, %v4057_v39 }
 0x2e8   : > { %v1668_v33 = vsel %vm827_vm9, %v1655_v34, %v1663_v61  ;;  %v1680_v43 = vsel %vm827_vm9, %v1663_v61, %v1639_v35  ;;  %v1779_v51 = vmul.f32 %v1766_v30, %v4054_v6 }
 0x2e9   : > { %v1665_v27 = vpop.permute.xlu0 %1664  ;;  %v2289_v23 = vpack.c.bf16 %v1695_v26, %v1691_v38  ;;  %v1690_v21 = vmul.f32 %v1680_v43, %v4052_v56  ;;  %v1693_v10 = vmul.f32 %v1668_v33, %v4053_v37  ;;  %v2315_v34 = vpack.c.bf16 %v1696_v58, %v1692_v18 }
 0x2ea   : > { %v1669_v47 = vsel %vm827_vm9, %v1657_v45, %v1665_v27  ;;  %v1681_v42 = vsel %vm827_vm9, %v1665_v27, %v1641_v12  ;;  %v1767_v12 = vsel %vm914_vm10, %v1741_v9, %v3720_v53  ;;  %v2327_v59 = vpack.c.bf16 %v1784_v11, %v1780_v52 }
 0x2eb   : > { %v1694_v41 = vmul.f32 %v1681_v42, %v4052_v56  ;;  %v1697_v46 = vmul.f32 %v1669_v47, %v4053_v37  ;;  %v1735_v48 = vpop.permute.xlu1 %1734  ;;  %2290 = vmatprep.subr.bf16.mxu0 %v2289_v23  ;;  %v1775_v56 = vsel %vm914_vm10, %v1757_v62, %v3716_v20  ;;  %v1783_v1 = vmul.f32 %v1767_v12, %v4054_v6  ;;  %v1631_v47 = vld [vmem:[%s3950_s4 + $0x8] sm:$0xff]  ;;  %v1632_v42 = vld [vmem:[%s3950_s4 + $0x10] sm:$0xff] }
 0x2ec   : > { %v1785_v25 = vmul.f32 %v1775_v56, %v4055_v54  ;;  %vm1882_vm9 = vcmask 785408   ;;  %v4058_v58 = vmov 0.0  }
 0x2ed   : > { %v2291_v17 = vpack.c.bf16 %v1694_v41, %v1690_v21  ;;  %v1737_v13 = vpop.permute.xlu0 %1736  ;;  %v2313_v35 = vpack.c.bf16 %v1697_v46, %v1693_v10  ;;  %v1633_v21 = vld [vmem:[%s3950_s4 + $0x18] sm:$0xff] }
 0x2ef   : > { %v1743_v45 = vpop.permute.xlu1 %1742  ;;  %2292 = vmatpush1.bf16.msra.mxu0 %v2291_v17  ;;  %2314 = vmatprep.subr.bf16.mxu1 %v2313_v35 }
 0x2f0   : > { %2294 = vmatprep.subr.bf16.mxu0 %v2293_v24  ;;  %2316 = vmatpush1.bf16.msra.mxu1 %v2315_v34  ;;  %v1774_v24 = vsel %vm914_vm10, %v1755_v8, %v3714_v57  ;;  %v4056_v57 = vld [vmem:[#allocation19_spill] sm:$0xff] }
 0x2f1   : > { %v1753_v37 = vpop.permute.xlu0 %1752  ;;  %2318 = vmatprep.subr.bf16.mxu1 %v2317_v36  ;;  %v1778_v53 = vmul.f32 %v1770_v40, %v4056_v57  ;;  %v1782_v9 = vmul.f32 %v1771_v50, %v4056_v57  ;;  %v1781_v31 = vmul.f32 %v1774_v24, %v4055_v54 }
 0x2f3   : > { %v1751_v36 = vpop.permute.xlu1 %1750  ;;  %2296 = vmatpush1.bf16.msra.mxu0 %v2295_v28  ;;  %v2325_v7 = vpack.c.bf16 %v1785_v25, %v1781_v31  ;;  %v2303_v38 = vpack.c.bf16 %v1782_v9, %v1778_v53 }
 0x2f4   : > { %v1768_v20 = vsel %vm914_vm10, %v1743_v45, %v1751_v36  ;;  %2298 = vmatprep.subr.bf16.mxu0 %v2297_v63  ;;  %2320 = vmatpush1.bf16.msra.mxu1 %v2319_v44  ;;  %v2301_v44 = vpack.c.bf16 %v1783_v1, %v1779_v51  ;;  %v1772_v63 = vsel %vm914_vm10, %v1735_v48, %v1743_v45 }
 0x2f5   : > { %v1745_v28 = vpop.permute.xlu0 %1744  ;;  %2322 = vmatprep.subr.bf16.mxu1 %v2321_v0  ;;  %v1787_v14 = vmul.f32 %v1768_v20, %v4054_v6 }
 0x2f6   : > { %v1769_v22 = vsel %vm914_vm10, %v1745_v28, %v1753_v37  ;;  %v1773_v32 = vsel %vm914_vm10, %v1737_v13, %v1745_v28 }
 0x2f7   : > { %v1791_v8 = vmul.f32 %v1769_v22, %v4054_v6  ;;  %v1759_v62 = vpop.permute.xlu1 %1758  ;;  %2300 = vmatpush1.bf16.msra.mxu0 %v2299_v29  ;;  %v1790_v5 = vmul.f32 %v1773_v32, %v4056_v57  ;;  %v1786_v29 = vmul.f32 %v1772_v63, %v4056_v57 }
 0x2f8   : > { %v1764_v0 = vsel %vm914_vm10, %v1751_v36, %v1759_v62  ;;  %v1776_v49 = vsel %vm914_vm10, %v1759_v62, %v1735_v48  ;;  %2302 = vmatprep.subr.bf16.mxu0 %v2301_v44  ;;  %2324 = vmatpush1.bf16.msra.mxu1 %v2323_v55 }
 0x2f9   : > { %v1761_v26 = vpop.permute.xlu0 %1760  ;;  %2326 = vmatprep.subr.bf16.mxu1 %v2325_v7  ;;  %v2305_v16 = vpack.c.bf16 %v1791_v8, %v1787_v14  ;;  %v1788_v43 = vmul.f32 %v1764_v0, %v4057_v39  ;;  %v1789_v2 = vmul.f32 %v1776_v49, %v4055_v54  ;;  %v2307_v3 = vpack.c.bf16 %v1790_v5, %v1786_v29 }
 0x2fa   : > { %v1765_v61 = vsel %vm914_vm10, %v1753_v37, %v1761_v26  ;;  %v1777_v33 = vsel %vm914_vm10, %v1761_v26, %v1737_v13 }
 0x2fb   : > { %v1792_v4 = vmul.f32 %v1765_v61, %v4057_v39  ;;  %v1793_v55 = vmul.f32 %v1777_v33, %v4055_v54  ;;  %2304 = vmatpush1.bf16.msra.mxu0 %v2303_v38 }
 0x2fc   : > { %2306 = vmatprep.subr.bf16.mxu0 %v2305_v16  ;;  %2328 = vmatpush1.bf16.msra.mxu1 %v2327_v59 }
 0x2fd   : > { %v2331_v27 = vpack.c.bf16 %v1792_v4, %v1788_v43  ;;  %v2329_v23 = vpack.c.bf16 %v1793_v55, %v1789_v2 }
 0x2ff   : > { %2308 = vmatpush1.bf16.msra.mxu0 %v2307_v3  ;;  %2330 = vmatprep.subr.bf16.mxu1 %v2329_v23 }
 0x300   : > { %2332 = vmatpush1.bf16.msra.mxu1 %v2331_v27 }
 0x302   : > { %2238 = vmatmul.mubr.msk.f32.vlgmr.msra.gmra.mrb[0].mxu0 %vm1882_vm9, %v1630_v19 }
 0x303   : > { %2242 = vmatmul.mubr.msk.f32.vlgmr.msra.gmra.mrb[0].mxu1 %vm1882_vm9, %v1630_v19  ;;  %1965 = vmatprep.mubr.f32.mxu0 %v4058_v58 }
 0x304   : > { %2054 = vmatprep.mubr.f32.mxu1 %v4058_v58 }
 0x306   : > { %2239 = vmatmul.mubr.msk.f32.gmra.mrb[2].mxu0 %vm1882_vm9, %v1631_v47 }
 0x307   : > { %2243 = vmatmul.mubr.msk.f32.gmra.mrb[2].mxu1 %vm1882_vm9, %v1631_v47  ;;  %1971 = vmatprep.mubr.f32.mxu0 %v4058_v58 }
 0x308   : > { %2060 = vmatprep.mubr.f32.mxu1 %v4058_v58  ;;  %v389_v10 = vpop.permute.xlu1 %388 }
 0x30a   : > { %2240 = vmatmul.mubr.msk.f32.gmra.mrb[4].mxu0 %vm1882_vm9, %v1632_v42  ;;  %v394_v41 = vpop.permute.xlu0 %393 }
 0x30b   : > { %2244 = vmatmul.mubr.msk.f32.gmra.mrb[4].mxu1 %vm1882_vm9, %v1632_v42  ;;  %1977 = vmatprep.mubr.f32.mxu0 %v4058_v58 }
 0x30c   : > { %2066 = vmatprep.mubr.f32.mxu1 %v4058_v58  ;;  %v399_v46 = vpop.permute.xlu1 %398 }
 0x30e   : > { %2241 = vmatmul.mubr.msk.f32.gmra.mrb[6].mxu0 %vm1882_vm9, %v1633_v21  ;;  %v404_v48 = vpop.permute.xlu0 %403 }
 0x30f   : > { %2245 = vmatmul.mubr.msk.f32.gmra.mrb[6].mxu1 %vm1882_vm9, %v1633_v21 }
 0x310   : > { %v1865_v18 = vpop.permute.xlu1 %1864 }
 0x311   : > { %v2333_v17 = vadd.f32 %v1865_v18, %v389_v10 }
 0x312   : > { %v1870_v13 = vpop.permute.xlu0 %1869 }
 0x313   : > { %v2337_v40 = vadd.f32 %v1870_v13, %v394_v41 }
 0x314   : > { %v1875_v6 = vpop.permute.xlu1 %1874 }
 0x315   : > { %v2341_v20 = vadd.f32 %v1875_v6, %v399_v46 }
 0x316   : > { %v1880_v53 = vpop.permute.xlu0 %1879 }
 0x317   : > { %v2345_v32 = vadd.f32 %v1880_v53, %v404_v48 }
 0x3d5   : > { %v1961_v35 = vpop.f32.mrb[0].mxu0 }
 0x3d6   : > { %v2334_v34 = vadd.f32 %v2333_v17, %v1961_v35  ;;  %v1963_v12 = vpop.f32.mrb[1].mxu0  ;;  %v2050_v45 = vpop.f32.mrb[0].mxu1 }
 0x3d7   : > { %v2336_v56 = vadd.f32 %v2333_v17, %v1963_v12  ;;  %v2350_v30 = vadd.f32 %v2333_v17, %v2050_v45  ;;  %v2052_v37 = vpop.f32.mrb[1].mxu1 }
 0x3d8   : > { %2089 = vst [vmem:[%s3877_s13] sm:$0xff] %v2334_v34  ;;  %v2352_v50 = vadd.f32 %v2333_v17, %v2052_v37 }
 0x3d9   : > { %2090 = vst [vmem:[%s3877_s13 + $0x8] sm:$0xff] %v2336_v56  ;;  %2091 = vst [vmem:[%s3877_s13 + $0x10] sm:$0xff] %v2350_v30  ;;  %v1967_v1 = vpop.f32.mrb[2].mxu0 }
 0x3da   : > { %2092 = vst [vmem:[%s3877_s13 + $0x18] sm:$0xff] %v2352_v50  ;;  %v2338_v24 = vadd.f32 %v2337_v40, %v1967_v1  ;;  %v1969_v15 = vpop.f32.mrb[3].mxu0  ;;  %v2056_v54 = vpop.f32.mrb[2].mxu1 }
 0x3db   : > { %v2340_v25 = vadd.f32 %v2337_v40, %v1969_v15  ;;  %v2354_v36 = vadd.f32 %v2337_v40, %v2056_v54  ;;  %v2058_v51 = vpop.f32.mrb[3].mxu1 }
 0x3dc   : > { %2093 = vst [vmem:[%s3877_s13 + $0x20] sm:$0xff] %v2338_v24  ;;  %v2356_v57 = vadd.f32 %v2337_v40, %v2058_v51 }
 0x3dd   : > { %2094 = vst [vmem:[%s3877_s13 + $0x28] sm:$0xff] %v2340_v25  ;;  %2095 = vst [vmem:[%s3877_s13 + $0x30] sm:$0xff] %v2354_v36  ;;  %v1973_v9 = vpop.f32.mrb[4].mxu0 }
 0x3de   : > { %2096 = vst [vmem:[%s3877_s13 + $0x38] sm:$0xff] %v2356_v57  ;;  %v2342_v60 = vadd.f32 %v2341_v20, %v1973_v9  ;;  %v1975_v31 = vpop.f32.mrb[5].mxu0  ;;  %v2062_v28 = vpop.f32.mrb[4].mxu1 }
 0x3df   : > { %v2344_v39 = vadd.f32 %v2341_v20, %v1975_v31  ;;  %v2358_v11 = vadd.f32 %v2341_v20, %v2062_v28  ;;  %v2064_v22 = vpop.f32.mrb[5].mxu1 }
 0x3e0   : > { %2097 = vst [vmem:[%s3877_s13 + $0x40] sm:$0xff] %v2342_v60  ;;  %v2360_v44 = vadd.f32 %v2341_v20, %v2064_v22 }
 0x3e1   : > { %2098 = vst [vmem:[%s3877_s13 + $0x48] sm:$0xff] %v2344_v39  ;;  %2099 = vst [vmem:[%s3877_s13 + $0x50] sm:$0xff] %v2358_v11  ;;  %v1979_v63 = vpop.f32.mrb[6].mxu0 }
 0x3e2   : > { %2100 = vst [vmem:[%s3877_s13 + $0x58] sm:$0xff] %v2360_v44  ;;  %v2346_v14 = vadd.f32 %v2345_v32, %v1979_v63  ;;  %v1981_v8 = vpop.f32.mrb[7].mxu0  ;;  %v2068_v62 = vpop.f32.mrb[6].mxu1 }
 0x3e3   : > { %v2348_v7 = vadd.f32 %v2345_v32, %v1981_v8  ;;  %v2362_v52 = vadd.f32 %v2345_v32, %v2068_v62  ;;  %v2070_v0 = vpop.f32.mrb[7].mxu1 }
 0x3e4   : > { %2101 = vst [vmem:[%s3877_s13 + $0x60] sm:$0xff] %v2346_v14  ;;  %v2364_v49 = vadd.f32 %v2345_v32, %v2070_v0 }
 0x3e5   : > { %2102 = vst [vmem:[%s3877_s13 + $0x68] sm:$0xff] %v2348_v7  ;;  %2103 = vst [vmem:[%s3877_s13 + $0x70] sm:$0xff] %v2362_v52 }
 0x3e6   : > { %2104 = vst [vmem:[%s3877_s13 + $0x78] sm:$0xff] %v2364_v49 }
 0x3e7   : > { %2617 = shalt.err (!%p2614_p2)
}
 0x3e8   : > { %s2618_s26 = scalar_lea.hbm %s3896_s9, 2048  ;;  %s2622_s13 = scalar_lea.hbm %s3954_s8, 4096 }
 0x3e9   : > { %p2619_p0 = scmp.ne.s32.totalorder %s3896_s9, %s2618_s26  ;;  %p2623_p5 = scmp.lt.u32.totalorder %s3896_s9, %s3954_s8 }
 0x3ea   : > { %p2624_p11 = scmp.lt.u32.totalorder %s2622_s13, %s2618_s26  ;;  %p2626_p4 = scmp.lt.u32.totalorder %s2618_s26, %s3896_s9 }
 0x3eb   : > { %p2620_p6 = pnand %p2619_p0, %p4059_p3 }
 0x3ec   : > { %p2625_p12 = por %p2624_p11, %p2623_p5 }
 0x3ed   : > { %p2621_p10 = pneg %p2620_p6 }
 0x3ee   : > { %p2627_p7 = por %p2626_p4, %p2625_p12 }
 0x3f0   : > { %p2628_p8 = pnand %p2627_p7, %p2621_p10 }
 0x3f2   : > { %2631 = shalt.err (!%p2628_p8)
}
 0x3f3   : > { %s2685_s23 = smov 512   ;;  %s2686_s20 = smov 1024  }
 0x3f4   : > { %s2687_s14 = smov 32  }
 0x3f5   : > { %2389 = dma.vmem_to_hbm [thread:$0]  (%p4059_p3), %s3898_s19, 2048, %s3896_s9, %s2106_s22, %s2685_s23, %s2686_s20, %s2687_s14  }
 0x3f6 PF: > { %s2134_s24 = sand.u32 1, %s2662_s27   ;;  %p4060_p9 = scmp.ne.s32.totalorder %s3993_s17, 0 }
 0x3f7   : > { %s2135_s25 = scalar_lea.sflag [#allocation5], %s2134_s24 }
 0x3f8   : > { %p2399_p13 = pnand %p2213_p1, %p4060_p9 }
 0x3fa   : > { %2657 = dma.done.wait (!%p2399_p13), %s2135_s25, 2048  }
 0x3fb   : > { %2659 = vsyncadd (!%p2399_p13), %s2135_s25, 4294965248  ;;  %s4061_s26 = sld [smem:[#allocation13_spill]]  ;;  %p20_p2 = scmp.ge.s32.totalorder %s2758_s11, 4  }
 0x3fc   : > { %s4062_s27 = smov %s2666_s28  ;;  %s4063_s28 = smov %s2670_s29 }
 0x3fd   : > { %s4065_s30 = smov %s2758_s11  ;;  %22 = sbr.rel (!%p20_p2) target bundleno = 5 (0x5), region = 124 }
 0x401   : > { %s4064_s29 = smov %s4061_s26 }
 0x404   :  { %2140 = vsyncpa [#allocation4], 1 }
 0x405   :  { %2142 = vsyncpa [#allocation4 + $0x1], 1 }
 0x406   :  { %2143 = vsyncpa [#allocation8], 1 }
 0x407   :  { %2144 = vsyncpa [#allocation5], 1 }
 0x408   :  { %2146 = vsyncpa [#allocation5 + $0x1], 1 }

</bundles_post_ra>
